<compile_context>
chip_gen: v7x
topology: tpu7x:2x2x1
jax: 0.10.0
libtpu: 0.0.40
codegen_flags: <defaults>
</compile_context>

<pallas_src>
import functools
import math

import jax
import jax.numpy as jnp
from jax import lax
from jax.experimental import pallas as pl
from jax.experimental.pallas import tpu as pltpu


# --------------------------------------------------------------------------- #
# Small helpers                                                                #
# --------------------------------------------------------------------------- #
def _largest_divisor_leq(n, target):
    for c in range(min(n, target), 0, -1):
        if n % c == 0:
            return c
    return 1


def _pick_batch_block(B, target=128):
    """Largest batch block that (a) divides B, (b) satisfies the sublane rule
    (multiple of 8, or the full dim), (c) is <= target rows.  Splitting a
    small batch only lengthens the serial recurrence on single-core chips."""
    if B <= target:
        return B
    for c in range(target, 0, -1):
        if B % c == 0 and c % 8 == 0:
            return c
    return B


def _row_start(i, bb):
    """Row offset i*bb, with an alignment hint when i is dynamic."""
    if isinstance(i, int):
        return i * bb
    return pl.multiple_of(i * bb, bb)


def _unrolled_loop(n, body, init, unroll):
    """carry = body(i, carry); trace-time unroll for short loops, else a
    blocked lax.fori_loop (keeps LLO scheduler visibility across iterations)."""
    if n <= unroll:
        carry = init
        for i in range(n):
            carry = body(i, carry)
        return carry
    u = min(unroll, n)
    while n % u:
        u -= 1

    def blk(j, carry):
        for s in range(u):
            carry = body(j * u + s, carry)
        return carry

    return lax.fori_loop(0, n // u, blk, init)


# --------------------------------------------------------------------------- #
# Pallas kernel                                                                #
# --------------------------------------------------------------------------- #
def _make_kernel(Tc, Bb, D, H, Hp, mxu_dtype, unroll):
    inv_sqrt_h = 1.0 / math.sqrt(H)
    f32 = jnp.float32
    H2, H3 = 2 * Hp, 3 * Hp

    def kernel(xm_ref, wgx_ref, bgx_ref, wxm3_ref, bzrh_ref,
               wgh_ref, bgh_ref, wh2_ref, whh_ref, xmean_ref, attnv_ref,
               out_ref,
               xlast_ref, mprev_ref, dltc_ref, h_ref, m_ref, l_ref, acc_ref,
               xh_s, mk_s, dl_s, pre_s, dh_s, hbuf_s):
        k = pl.program_id(1)

        # -------- (re)initialize carries at the first T chunk of each batch --
        @pl.when(k == 0)
        def _init():
            h_ref[...] = jnp.zeros((Bb, Hp), f32)
            acc_ref[...] = jnp.zeros((Bb, Hp), f32)
            m_ref[...] = jnp.full((Bb, 1), -jnp.inf, f32)
            l_ref[...] = jnp.zeros((Bb, 1), f32)
            dltc_ref[...] = jnp.zeros((Bb, D), f32)
            mprev_ref[...] = jnp.ones((Bb, D), f32)
            # Last-observed-value carry starts at x[0] (get_input_for_grud).
            xlast_ref[...] = xm_ref[0][:, 0:D]

        w_gx = wgx_ref[...]          # (1, D)  diagonal FilterLinear weight
        b_gx = bgx_ref[...]          # (1, D)
        x_mean = xmean_ref[...]      # (1, D)

        # -------- phase 1: fused get_input_for_grud + imputation (VPU only) --
        def prep(i, carry):
            xl_p, mk_p, dl_p = carry
            row = xm_ref[i]                        # (Bb, 2D+1) = [x | mask | dt]
            x_t = row[:, 0:D]
            mk_t = row[:, D:2 * D]
            dt_t = row[:, 2 * D:2 * D + 1]         # (Bb, 1)
            dl_t = dt_t + (1.0 - mk_p) * dl_p      # time delta        (Bb, D)
            xl_t = mk_t * x_t + (1.0 - mk_t) * xl_p  # last observed value
            delta_x = jnp.exp(-jnp.maximum(dl_t * w_gx + b_gx, 0.0))
            x_hat = mk_t * x_t + (1.0 - mk_t) * (
                delta_x * xl_t + (1.0 - delta_x) * x_mean)
            r0 = _row_start(i, Bb)
            xh_s[pl.ds(r0, Bb), :] = x_hat
            mk_s[pl.ds(r0, Bb), :] = mk_t
            dl_s[pl.ds(r0, Bb), :] = dl_t
            return xl_t, mk_t, dl_t

        xl_f, mk_f, dl_f = _unrolled_loop(
            Tc, prep, (xlast_ref[...], mprev_ref[...], dltc_ref[...]), unroll)
        xlast_ref[...] = xl_f
        mprev_ref[...] = mk_f
        dltc_ref[...] = dl_f

        # -------- phase 2: hoisted batched gate pre-activations ---------------
        # Single fused matmul: [x_hat | mask] @ [[w_zx|w_rx|w_hx],
        #                                        [w_zm|w_rm|w_hm]]
        xhm = jnp.concatenate([xh_s[...], mk_s[...]], axis=1)   # (Tc*Bb, 2D)
        if mxu_dtype is not None:   # bf16 MXU inputs, f32 accumulation
            xhm = xhm.astype(mxu_dtype)
        pre_s[...] = (jnp.dot(xhm, wxm3_ref[...], preferred_element_type=f32)
                      + bzrh_ref[...])                          # (Tc*Bb, 3Hp)
        gamma_h = (jnp.dot(dl_s[...], wgh_ref[...], preferred_element_type=f32)
                   + bgh_ref[...])
        dh_s[...] = jnp.exp(-jnp.maximum(gamma_h, 0.0))         # (Tc*Bb, Hp)

        # -------- phase 3: serial GRU-D recurrence (h-dependent matmuls only) -
        w_h2 = wh2_ref[...]          # (Hp, 2Hp) = [w_zh | w_rh]
        w_hh = whh_ref[...]          # (Hp, Hp)

        def step(i, h):
            r0 = _row_start(i, Bb)
            pre = pre_s[pl.ds(r0, Bb), :]                       # (Bb, 3Hp)
            h_dec = dh_s[pl.ds(r0, Bb), :] * h
            zr = jax.nn.sigmoid(
                pre[:, 0:H2]
                + jnp.dot(h_dec, w_h2, preferred_element_type=f32))
            z = zr[:, 0:Hp]
            r = zr[:, Hp:H2]
            h_tilde = jnp.tanh(
                pre[:, H2:H3]
                + jnp.dot(r * h_dec, w_hh, preferred_element_type=f32))
            h_new = (1.0 - z) * h_dec + z * h_tilde
            hbuf_s[i] = h_new
            return h_new

        h_ref[...] = _unrolled_loop(Tc, step, h_ref[...], unroll)

        # -------- phase 4: chunk-level attention pooling (online softmax) -----
        hc = hbuf_s[...]                                        # (Tc, Bb, Hp)
        attn_v = attnv_ref[...]                                 # (1, Hp)
        s = jnp.sum(hc * attn_v, axis=-1, keepdims=True) * inv_sqrt_h
        m_prev = m_ref[...]                                     # (Bb, 1)
        m_new = jnp.maximum(m_prev, jnp.max(s, axis=0))
        alpha = jnp.exp(m_prev - m_new)
        p = jnp.exp(s - m_new)                                  # (Tc, Bb, 1)
        l_ref[...] = alpha * l_ref[...] + jnp.sum(p, axis=0)
        acc_ref[...] = alpha * acc_ref[...] + jnp.sum(p * hc, axis=0)
        m_ref[...] = m_new

        # -------- finalize -----------------------------------------------------
        @pl.when(k == pl.num_programs(1) - 1)
        def _fin():
            out_ref[...] = acc_ref[...] / l_ref[...]

    return kernel


# --------------------------------------------------------------------------- #
# Parameter fusion / lane-dense padding (wrapper side)                         #
# --------------------------------------------------------------------------- #
def _fuse_params(params, D, H, Hp, mxu_dtype):
    f32 = jnp.float32

    def pcols(w):   # pad trailing hidden dim H -> Hp with zeros
        return jnp.pad(w.astype(f32), [(0, 0)] * (w.ndim - 1) + [(0, Hp - H)])

    def prows(w):   # pad leading hidden dim H -> Hp with zeros
        return jnp.pad(w.astype(f32), [(0, Hp - H)] + [(0, 0)] * (w.ndim - 1))

    wx3 = jnp.concatenate([pcols(params["w_zx"]), pcols(params["w_rx"]),
                           pcols(params["w_hx"])], axis=1)        # (D, 3Hp)
    wm3 = jnp.concatenate([pcols(params["w_zm"]), pcols(params["w_rm"]),
                           pcols(params["w_hm"])], axis=1)        # (D, 3Hp)
    wxm3 = jnp.concatenate([wx3, wm3], axis=0)                    # (2D, 3Hp)
    b_zrh = jnp.concatenate([pcols(params["b_z"]), pcols(params["b_r"]),
                             pcols(params["b_h"])], axis=1)       # (1, 3Hp)
    w_gh = pcols(params["w_gh"])                                  # (D, Hp)
    b_gh = pcols(params["b_gh"])                                  # (1, Hp)
    w_h2 = jnp.concatenate([prows(pcols(params["w_zh"])),
                            prows(pcols(params["w_rh"]))], axis=1)  # (Hp, 2Hp)
    w_hh = prows(pcols(params["w_hh"]))                           # (Hp, Hp)
    attn_v = pcols(params["attn_v"])                              # (1, Hp)
    if mxu_dtype is not None:
        wxm3 = wxm3.astype(mxu_dtype)
    return (params["w_gx"].astype(f32), params["b_gx"].astype(f32),
            wxm3, b_zrh, w_gh, b_gh, w_h2, w_hh, attn_v)


# --------------------------------------------------------------------------- #
# Wrapper                                                                      #
# --------------------------------------------------------------------------- #
@functools.partial(jax.jit,
                   static_argnames=("chunk_target", "mxu_dtype", "batch_block"))
def grud_encoder_forward(x, t, mask, params, *, chunk_target=64,
                         mxu_dtype=jnp.bfloat16, batch_block=None):
    T, B, D = x.shape
    H = params["attn_v"].shape[-1]
    Hp = ((H + 127) // 128) * 128               # lane-dense hidden width
    Tc = _largest_divisor_leq(T, chunk_target)  # T-chunk size (divides T)
    Bb = _pick_batch_block(B) if batch_block is None else batch_block
    assert B % Bb == 0 and (Bb % 8 == 0 or Bb == B), (B, Bb)
    nb, nk = B // Bb, T // Tc

    f32 = jnp.float32
    x = x.astype(f32)
    mask = mask.astype(f32)
    t = t.astype(f32)
    dt = jnp.diff(t, axis=0, prepend=t[0:1])                       # (T,B), dt0=0
    # TODO(synk): +1e-8 guard — never-observed features get a ~0 mean.
    x_mean = (jnp.sum(x * mask, axis=(0, 1))
              / (jnp.sum(mask, axis=(0, 1)) + 1e-8)).reshape(1, D)
    # Single lane-packed input slab: [x | mask | dt] along the feature axis.
    slab = jnp.concatenate([x, mask, dt[..., None]], axis=-1)      # (T,B,2D+1)

    fused = _fuse_params(params, D, H, Hp, mxu_dtype)
    (w_gx, b_gx, wxm3, b_zrh, w_gh, b_gh, w_h2, w_hh, attn_v) = fused

    def cspec(shape):
        return pl.BlockSpec(shape, lambda b, k: (0,) * len(shape))

    kernel = _make_kernel(Tc, Bb, D, H, Hp, mxu_dtype, unroll=8)

    out_padded = pl.pallas_call(
        kernel,
        out_shape=jax.ShapeDtypeStruct((B, Hp), f32),
        grid_spec=pltpu.PrefetchScalarGridSpec(
            num_scalar_prefetch=0,
            grid=(nb, nk),
            in_specs=[
                pl.BlockSpec((Tc, Bb, 2 * D + 1), lambda b, k: (k, b, 0)),
                cspec((1, D)),           # w_gx  (diagonal decay weight)
                cspec((1, D)),           # b_gx
                cspec((2 * D, 3 * Hp)),  # fused [w_zx|w_rx|w_hx ; w_zm|w_rm|w_hm]
                cspec((1, 3 * Hp)),      # fused [b_z|b_r|b_h]
                cspec((D, Hp)),          # w_gh
                cspec((1, Hp)),          # b_gh
                cspec((Hp, 2 * Hp)),     # fused [w_zh|w_rh]
                cspec((Hp, Hp)),         # w_hh
                cspec((1, D)),           # x_mean
                cspec((1, Hp)),          # attn_v
            ],
            out_specs=pl.BlockSpec((Bb, Hp), lambda b, k: (b, 0)),
            scratch_shapes=[
                pltpu.VMEM((Bb, D), f32),            # last observed value carry
                pltpu.VMEM((Bb, D), f32),            # previous mask carry
                pltpu.VMEM((Bb, D), f32),            # time-delta carry
                pltpu.VMEM((Bb, Hp), f32),           # hidden state carry
                pltpu.VMEM((Bb, 1), f32),            # online-softmax max
                pltpu.VMEM((Bb, 1), f32),            # online-softmax denom
                pltpu.VMEM((Bb, Hp), f32),           # online-softmax numerator
                pltpu.VMEM((Tc * Bb, D), f32),       # x_hat for the chunk
                pltpu.VMEM((Tc * Bb, D), f32),       # mask  for the chunk
                pltpu.VMEM((Tc * Bb, D), f32),       # delta for the chunk
                pltpu.VMEM((Tc * Bb, 3 * Hp), f32),  # gate pre-activations
                pltpu.VMEM((Tc * Bb, Hp), f32),      # precomputed delta_h
                pltpu.VMEM((Tc, Bb, Hp), f32),       # per-chunk hidden states
            ]),
        compiler_params=pltpu.CompilerParams(
            dimension_semantics=("parallel", "arbitrary"),
            vmem_limit_bytes=32 * 1024 * 1024),
    )(slab, w_gx, b_gx, wxm3, b_zrh, w_gh, b_gh, w_h2, w_hh, x_mean, attn_v)

    return out_padded[:, :H]


# --------------------------------------------------------------------------- #
# Pure-JAX reference (independent f32 math, for the self-check)                #
# --------------------------------------------------------------------------- #
def ref_forward(x, t, mask, params):
    T, B, D = x.shape
    H = params["attn_v"].shape[-1]
    x = x.astype(jnp.float32)
    mask = mask.astype(jnp.float32)

    # get_input_for_grud: last-observed carry, time deltas, masked feature mean.
    def lo_step(carry, inp):
        x_t, m_t = inp
        xl = m_t * x_t + (1.0 - m_t) * carry
        return xl, xl

    _, x_last = lax.scan(lo_step, x[0], (x, mask))                 # (T,B,D)

    dt = jnp.diff(t, axis=0, prepend=t[0:1])                       # (T,B)

    def d_step(carry, inp):
        dt_t, m_prev = inp
        d = dt_t[:, None] + (1.0 - m_prev) * carry
        return d, d

    m_prev = jnp.concatenate([jnp.ones((1, B, D), x.dtype), mask[:-1]], axis=0)
    _, delta = lax.scan(d_step, jnp.zeros((B, D), x.dtype), (dt, m_prev))

    x_mean = (jnp.sum(x * mask, axis=(0, 1))
              / (jnp.sum(mask, axis=(0, 1)) + 1e-8)).reshape(1, D)

    h = jnp.zeros((B, H), jnp.float32)
    hs = []
    for i in range(T):
        dl_t, mk_t, x_t, xl_t = delta[i], mask[i], x[i], x_last[i]
        delta_x = jnp.exp(-jnp.maximum(dl_t * params["w_gx"] + params["b_gx"], 0.0))
        delta_h = jnp.exp(-jnp.maximum(dl_t @ params["w_gh"] + params["b_gh"], 0.0))
        x_hat = mk_t * x_t + (1 - mk_t) * (delta_x * xl_t + (1 - delta_x) * x_mean)
        h = delta_h * h
        z = jax.nn.sigmoid(x_hat @ params["w_zx"] + h @ params["w_zh"]
                           + mk_t @ params["w_zm"] + params["b_z"])
        r = jax.nn.sigmoid(x_hat @ params["w_rx"] + h @ params["w_rh"]
                           + mk_t @ params["w_rm"] + params["b_r"])
        h_tilde = jnp.tanh(x_hat @ params["w_hx"] + (r * h) @ params["w_hh"]
                           + mk_t @ params["w_hm"] + params["b_h"])
        h = (1 - z) * h + z * h_tilde
        hs.append(h)
    hmat = jnp.stack(hs, axis=0)                                   # (T,B,H)
    score = jnp.einsum("tbh,h->tb", hmat, params["attn_v"][0]) / math.sqrt(H)
    w = jax.nn.softmax(score, axis=0)
    return jnp.sum(hmat * w[..., None], axis=0)                    # (B,H)


# --------------------------------------------------------------------------- #
# Deterministic parameter init (PyTorch nn.Linear-style uniform bounds)        #
# --------------------------------------------------------------------------- #
def init_params(key, input_dim, hidden_dim):
    D, H = input_dim, hidden_dim
    ks = jax.random.split(key, 16)
    cat = D + H + D

    def uni(k, shape, fan_in):
        b = 1.0 / math.sqrt(fan_in)
        return jax.random.uniform(k, shape, jnp.float32, -b, b)

    return dict(
        w_gx=uni(ks[0], (1, D), D), b_gx=uni(ks[1], (1, D), D),
        w_gh=uni(ks[2], (D, H), D), b_gh=uni(ks[3], (1, H), D),
        w_zx=uni(ks[4], (D, H), cat), w_zh=uni(ks[5], (H, H), cat),
        w_zm=uni(ks[6], (D, H), cat), b_z=uni(ks[7], (1, H), cat),
        w_rx=uni(ks[8], (D, H), cat), w_rh=uni(ks[9], (H, H), cat),
        w_rm=uni(ks[10], (D, H), cat), b_r=uni(ks[11], (1, H), cat),
        w_hx=uni(ks[12], (D, H), cat), w_hh=uni(ks[13], (H, H), cat),
        w_hm=uni(ks[14], (D, H), cat), b_h=uni(ks[15], (1, H), cat),
        attn_v=jnp.ones((1, H), jnp.float32),   # attn_v_init = torch.ones(H)
    )


if __name__ == "__main__":
    T, B, D, H = 8, 16, 4, 32   # seq, batch, input_dim, hidden_dim

    key = jax.random.PRNGKey(0)
    k_x, k_t, k_m, k_p = jax.random.split(key, 4)

    x = jax.random.normal(k_x, (T, B, D), jnp.float32)
    t = jnp.cumsum(jax.random.uniform(k_t, (T, B), jnp.float32, 0.1, 1.0), axis=0)
    mask = (jax.random.uniform(k_m, (T, B, D)) > 0.3).astype(jnp.float32)
    params = init_params(k_p, D, H)

    # f32 MXU path, single batch block (grid (1, 2)): single-core-friendly
    # default — the serial recurrence runs exactly T steps.
    C32 = jax.block_until_ready(
        grud_encoder_forward(x, t, mask, params, chunk_target=4, mxu_dtype=None))
    # f32 path with the batch split into two blocks (grid (2, 2)): exercises
    # the "parallel" batch axis + cross-chunk carries with nb > 1 (v7x megacore).
    C32s = jax.block_until_ready(
        grud_encoder_forward(x, t, mask, params, chunk_target=4, mxu_dtype=None,
                             batch_block=8))
    # bf16 MXU path for the hoisted batched gate matmul (v6e/v7x recommendation).
    Cbf = jax.block_until_ready(
        grud_encoder_forward(x, t, mask, params, chunk_target=4,
                             mxu_dtype=jnp.bfloat16, batch_block=8))

    C_ref = jax.block_until_ready(ref_forward(x, t, mask, params))

    assert C32.shape == (B, H) and C32s.shape == (B, H) and Cbf.shape == (B, H)
    err32 = jnp.max(jnp.abs(C32 - C_ref))
    err32s = jnp.max(jnp.abs(C32s - C_ref))
    errbf = jnp.max(jnp.abs(Cbf - C_ref))
    assert jnp.allclose(C32, C_ref, atol=1e-4, rtol=1e-4), f"f32 max abs err {err32}"
    assert jnp.allclose(C32s, C_ref, atol=1e-4, rtol=1e-4), f"f32-split max abs err {err32s}"
    assert jnp.allclose(Cbf, C_ref, atol=3e-2, rtol=3e-2), f"bf16 max abs err {errbf}"
    print("KERNEL_OK")
</pallas_src>

<mosaic_0001>
module attributes {stable_mosaic.version = 11 : i64} {
  func.func @kernel(%arg0: i32, %arg1: i32, %arg2: memref<4x16x9xf32, #tpu.memory_space<vmem>>, %arg3: memref<1x4xf32, #tpu.memory_space<vmem>>, %arg4: memref<1x4xf32, #tpu.memory_space<vmem>>, %arg5: memref<8x384xf32, #tpu.memory_space<vmem>>, %arg6: memref<1x384xf32, #tpu.memory_space<vmem>>, %arg7: memref<4x128xf32, #tpu.memory_space<vmem>>, %arg8: memref<1x128xf32, #tpu.memory_space<vmem>>, %arg9: memref<128x256xf32, #tpu.memory_space<vmem>>, %arg10: memref<128x128xf32, #tpu.memory_space<vmem>>, %arg11: memref<1x4xf32, #tpu.memory_space<vmem>>, %arg12: memref<1x128xf32, #tpu.memory_space<vmem>>, %arg13: memref<16x128xf32, #tpu.memory_space<vmem>>, %arg14: memref<16x4xf32, #tpu.memory_space<vmem>>, %arg15: memref<16x4xf32, #tpu.memory_space<vmem>>, %arg16: memref<16x4xf32, #tpu.memory_space<vmem>>, %arg17: memref<16x128xf32, #tpu.memory_space<vmem>>, %arg18: memref<16x1xf32, #tpu.memory_space<vmem>>, %arg19: memref<16x1xf32, #tpu.memory_space<vmem>>, %arg20: memref<16x128xf32, #tpu.memory_space<vmem>>, %arg21: memref<64x4xf32, #tpu.memory_space<vmem>>, %arg22: memref<64x4xf32, #tpu.memory_space<vmem>>, %arg23: memref<64x4xf32, #tpu.memory_space<vmem>>, %arg24: memref<64x384xf32, #tpu.memory_space<vmem>>, %arg25: memref<64x128xf32, #tpu.memory_space<vmem>>, %arg26: memref<4x16x128xf32, #tpu.memory_space<vmem>>) attributes {dimension_semantics = [#tpu.dimension_semantics<parallel>, #tpu.dimension_semantics<arbitrary>], iteration_bounds = array<i64: 1, 2>, scalar_prefetch = 0 : i64, scratch_operands = 13 : i64, tpu.core_type = #tpu.core_type<tc>, window_params = [{transform_indices = @transform_0, window_bounds = array<i64: 4, 16, 9>}, {pipeline_mode = #tpu.pipeline_mode<synchronous>, transform_indices = @transform_1, window_bounds = array<i64: 1, 4>}, {pipeline_mode = #tpu.pipeline_mode<synchronous>, transform_indices = @transform_2, window_bounds = array<i64: 1, 4>}, {pipeline_mode = #tpu.pipeline_mode<synchronous>, transform_indices = @transform_3, window_bounds = array<i64: 8, 384>}, {pipeline_mode = #tpu.pipeline_mode<synchronous>, transform_indices = @transform_4, window_bounds = array<i64: 1, 384>}, {pipeline_mode = #tpu.pipeline_mode<synchronous>, transform_indices = @transform_5, window_bounds = array<i64: 4, 128>}, {pipeline_mode = #tpu.pipeline_mode<synchronous>, transform_indices = @transform_6, window_bounds = array<i64: 1, 128>}, {pipeline_mode = #tpu.pipeline_mode<synchronous>, transform_indices = @transform_7, window_bounds = array<i64: 128, 256>}, {pipeline_mode = #tpu.pipeline_mode<synchronous>, transform_indices = @transform_8, window_bounds = array<i64: 128, 128>}, {pipeline_mode = #tpu.pipeline_mode<synchronous>, transform_indices = @transform_9, window_bounds = array<i64: 1, 4>}, {pipeline_mode = #tpu.pipeline_mode<synchronous>, transform_indices = @transform_10, window_bounds = array<i64: 1, 128>}, {transform_indices = @transform_11, window_bounds = array<i64: 16, 128>}]} {
    %c0_i32 = arith.constant 0 : i32
    %0 = arith.cmpi eq, %arg1, %c0_i32 : i32
    %1 = arith.extui %0 : i1 to i32
    %c0_i32_0 = arith.constant 0 : i32
    %2 = arith.cmpi ne, %1, %c0_i32_0 : i32
    scf.if %2 {
      %cst_168 = arith.constant 0.000000e+00 : f32
      %328 = vector.broadcast %cst_168 : f32 to vector<16x128xf32>
      %c0_169 = arith.constant 0 : index
      %c0_170 = arith.constant 0 : index
      %329 = vector.load %arg17[%c0_169, %c0_170] : memref<16x128xf32, #tpu.memory_space<vmem>>, vector<16x128xf32>
      tpu.vector_store %arg17[%c0_169, %c0_170], %328 {strides = array<i32>} : memref<16x128xf32, #tpu.memory_space<vmem>>, vector<16x128xf32>,
      %cst_171 = arith.constant 0.000000e+00 : f32
      %330 = vector.broadcast %cst_171 : f32 to vector<16x128xf32>
      %c0_172 = arith.constant 0 : index
      %c0_173 = arith.constant 0 : index
      %331 = vector.load %arg20[%c0_172, %c0_173] : memref<16x128xf32, #tpu.memory_space<vmem>>, vector<16x128xf32>
      tpu.vector_store %arg20[%c0_172, %c0_173], %330 {strides = array<i32>} : memref<16x128xf32, #tpu.memory_space<vmem>>, vector<16x128xf32>,
      %cst_174 = arith.constant 0xFF800000 : f32
      %332 = vector.broadcast %cst_174 : f32 to vector<16x1xf32>
      %c0_175 = arith.constant 0 : index
      %c0_176 = arith.constant 0 : index
      %333 = vector.load %arg18[%c0_175, %c0_176] : memref<16x1xf32, #tpu.memory_space<vmem>>, vector<16x1xf32>
      tpu.vector_store %arg18[%c0_175, %c0_176], %332 {strides = array<i32>} : memref<16x1xf32, #tpu.memory_space<vmem>>, vector<16x1xf32>,
      %cst_177 = arith.constant 0.000000e+00 : f32
      %334 = vector.broadcast %cst_177 : f32 to vector<16x1xf32>
      %c0_178 = arith.constant 0 : index
      %c0_179 = arith.constant 0 : index
      %335 = vector.load %arg19[%c0_178, %c0_179] : memref<16x1xf32, #tpu.memory_space<vmem>>, vector<16x1xf32>
      tpu.vector_store %arg19[%c0_178, %c0_179], %334 {strides = array<i32>} : memref<16x1xf32, #tpu.memory_space<vmem>>, vector<16x1xf32>,
      %cst_180 = arith.constant 0.000000e+00 : f32
      %336 = vector.broadcast %cst_180 : f32 to vector<16x4xf32>
      %c0_181 = arith.constant 0 : index
      %c0_182 = arith.constant 0 : index
      %337 = vector.load %arg16[%c0_181, %c0_182] : memref<16x4xf32, #tpu.memory_space<vmem>>, vector<16x4xf32>
      tpu.vector_store %arg16[%c0_181, %c0_182], %336 {strides = array<i32>} : memref<16x4xf32, #tpu.memory_space<vmem>>, vector<16x4xf32>,
      %cst_183 = arith.constant 1.000000e+00 : f32
      %338 = vector.broadcast %cst_183 : f32 to vector<16x4xf32>
      %c0_184 = arith.constant 0 : index
      %c0_185 = arith.constant 0 : index
      %339 = vector.load %arg15[%c0_184, %c0_185] : memref<16x4xf32, #tpu.memory_space<vmem>>, vector<16x4xf32>
      tpu.vector_store %arg15[%c0_184, %c0_185], %338 {strides = array<i32>} : memref<16x4xf32, #tpu.memory_space<vmem>>, vector<16x4xf32>,
      %c0_186 = arith.constant 0 : index
      %c0_187 = arith.constant 0 : index
      %c0_188 = arith.constant 0 : index
      %340 = vector.load %arg2[%c0_186, %c0_187, %c0_188] : memref<4x16x9xf32, #tpu.memory_space<vmem>>, vector<1x16x9xf32>
      %341 = vector.shape_cast %340 : vector<1x16x9xf32> to vector<16x9xf32>
      %342 = vector.extract_strided_slice %341 {offsets = [0, 0], sizes = [16, 4], strides = [1, 1]} : vector<16x9xf32> to vector<16x4xf32>
      %c0_189 = arith.constant 0 : index
      %c0_190 = arith.constant 0 : index
      %343 = vector.load %arg14[%c0_189, %c0_190] : memref<16x4xf32, #tpu.memory_space<vmem>>, vector<16x4xf32>
      tpu.vector_store %arg14[%c0_189, %c0_190], %342 {strides = array<i32>} : memref<16x4xf32, #tpu.memory_space<vmem>>, vector<16x4xf32>,
    } else {
    }
    %c0 = arith.constant 0 : index
    %c0_1 = arith.constant 0 : index
    %3 = vector.load %arg3[%c0, %c0_1] : memref<1x4xf32, #tpu.memory_space<vmem>>, vector<1x4xf32>
    %c0_2 = arith.constant 0 : index
    %c0_3 = arith.constant 0 : index
    %4 = vector.load %arg4[%c0_2, %c0_3] : memref<1x4xf32, #tpu.memory_space<vmem>>, vector<1x4xf32>
    %c0_4 = arith.constant 0 : index
    %c0_5 = arith.constant 0 : index
    %5 = vector.load %arg11[%c0_4, %c0_5] : memref<1x4xf32, #tpu.memory_space<vmem>>, vector<1x4xf32>
    %c0_6 = arith.constant 0 : index
    %c0_7 = arith.constant 0 : index
    %6 = vector.load %arg14[%c0_6, %c0_7] : memref<16x4xf32, #tpu.memory_space<vmem>>, vector<16x4xf32>
    %c0_8 = arith.constant 0 : index
    %c0_9 = arith.constant 0 : index
    %7 = vector.load %arg15[%c0_8, %c0_9] : memref<16x4xf32, #tpu.memory_space<vmem>>, vector<16x4xf32>
    %c0_10 = arith.constant 0 : index
    %c0_11 = arith.constant 0 : index
    %8 = vector.load %arg16[%c0_10, %c0_11] : memref<16x4xf32, #tpu.memory_space<vmem>>, vector<16x4xf32>
    %c0_12 = arith.constant 0 : index
    %c0_13 = arith.constant 0 : index
    %c0_14 = arith.constant 0 : index
    %9 = vector.load %arg2[%c0_12, %c0_13, %c0_14] : memref<4x16x9xf32, #tpu.memory_space<vmem>>, vector<1x16x9xf32>
    %10 = vector.shape_cast %9 : vector<1x16x9xf32> to vector<16x9xf32>
    %11 = vector.extract_strided_slice %10 {offsets = [0, 0], sizes = [16, 4], strides = [1, 1]} : vector<16x9xf32> to vector<16x4xf32>
    %12 = vector.extract_strided_slice %10 {offsets = [0, 4], sizes = [16, 4], strides = [1, 1]} : vector<16x9xf32> to vector<16x4xf32>
    %13 = vector.extract_strided_slice %10 {offsets = [0, 8], sizes = [16, 1], strides = [1, 1]} : vector<16x9xf32> to vector<16x1xf32>
    %cst = arith.constant 1.000000e+00 : f32
    %14 = vector.broadcast %cst : f32 to vector<16x4xf32>
    %15 = arith.subf %14, %7 : vector<16x4xf32>
    %16 = arith.mulf %15, %8 : vector<16x4xf32>
    %17 = vector.broadcast %13 : vector<16x1xf32> to vector<16x4xf32>
    %18 = arith.addf %17, %16 : vector<16x4xf32>
    %19 = arith.mulf %12, %11 : vector<16x4xf32>
    %cst_15 = arith.constant 1.000000e+00 : f32
    %20 = vector.broadcast %cst_15 : f32 to vector<16x4xf32>
    %21 = arith.subf %20, %12 : vector<16x4xf32>
    %22 = arith.mulf %21, %6 : vector<16x4xf32>
    %23 = arith.addf %19, %22 : vector<16x4xf32>
    %24 = vector.broadcast %3 : vector<1x4xf32> to vector<16x4xf32>
    %25 = arith.mulf %18, %24 : vector<16x4xf32>
    %26 = vector.broadcast %4 : vector<1x4xf32> to vector<16x4xf32>
    %27 = arith.addf %25, %26 : vector<16x4xf32>
    %cst_16 = arith.constant 0.000000e+00 : f32
    %28 = vector.broadcast %cst_16 : f32 to vector<16x4xf32>
    %29 = arith.maximumf %27, %28 : vector<16x4xf32>
    %cst_17 = arith.constant 0.000000e+00 : f32
    %30 = vector.broadcast %cst_17 : f32 to vector<16x4xf32>
    %31 = arith.subf %30, %29 : vector<16x4xf32>
    %32 = math.exp %31 : vector<16x4xf32>
    %33 = arith.mulf %12, %11 : vector<16x4xf32>
    %cst_18 = arith.constant 1.000000e+00 : f32
    %34 = vector.broadcast %cst_18 : f32 to vector<16x4xf32>
    %35 = arith.subf %34, %12 : vector<16x4xf32>
    %36 = arith.mulf %32, %23 : vector<16x4xf32>
    %cst_19 = arith.constant 1.000000e+00 : f32
    %37 = vector.broadcast %cst_19 : f32 to vector<16x4xf32>
    %38 = arith.subf %37, %32 : vector<16x4xf32>
    %39 = vector.broadcast %5 : vector<1x4xf32> to vector<16x4xf32>
    %40 = arith.mulf %38, %39 : vector<16x4xf32>
    %41 = arith.addf %36, %40 : vector<16x4xf32>
    %42 = arith.mulf %35, %41 : vector<16x4xf32>
    %43 = arith.addf %33, %42 : vector<16x4xf32>
    %c0_20 = arith.constant 0 : index
    %c0_21 = arith.constant 0 : index
    %44 = vector.load %arg21[%c0_20, %c0_21] : memref<64x4xf32, #tpu.memory_space<vmem>>, vector<16x4xf32>
    tpu.vector_store %arg21[%c0_20, %c0_21], %43 {strides = array<i32>} : memref<64x4xf32, #tpu.memory_space<vmem>>, vector<16x4xf32>,
    %c0_22 = arith.constant 0 : index
    %c0_23 = arith.constant 0 : index
    %45 = vector.load %arg22[%c0_22, %c0_23] : memref<64x4xf32, #tpu.memory_space<vmem>>, vector<16x4xf32>
    tpu.vector_store %arg22[%c0_22, %c0_23], %12 {strides = array<i32>} : memref<64x4xf32, #tpu.memory_space<vmem>>, vector<16x4xf32>,
    %c0_24 = arith.constant 0 : index
    %c0_25 = arith.constant 0 : index
    %46 = vector.load %arg23[%c0_24, %c0_25] : memref<64x4xf32, #tpu.memory_space<vmem>>, vector<16x4xf32>
    tpu.vector_store %arg23[%c0_24, %c0_25], %18 {strides = array<i32>} : memref<64x4xf32, #tpu.memory_space<vmem>>, vector<16x4xf32>,
    %c1 = arith.constant 1 : index
    %c0_26 = arith.constant 0 : index
    %c0_27 = arith.constant 0 : index
    %47 = vector.load %arg2[%c1, %c0_26, %c0_27] : memref<4x16x9xf32, #tpu.memory_space<vmem>>, vector<1x16x9xf32>
    %48 = vector.shape_cast %47 : vector<1x16x9xf32> to vector<16x9xf32>
    %49 = vector.extract_strided_slice %48 {offsets = [0, 0], sizes = [16, 4], strides = [1, 1]} : vector<16x9xf32> to vector<16x4xf32>
    %50 = vector.extract_strided_slice %48 {offsets = [0, 4], sizes = [16, 4], strides = [1, 1]} : vector<16x9xf32> to vector<16x4xf32>
    %51 = vector.extract_strided_slice %48 {offsets = [0, 8], sizes = [16, 1], strides = [1, 1]} : vector<16x9xf32> to vector<16x1xf32>
    %cst_28 = arith.constant 1.000000e+00 : f32
    %52 = vector.broadcast %cst_28 : f32 to vector<16x4xf32>
    %53 = arith.subf %52, %12 : vector<16x4xf32>
    %54 = arith.mulf %53, %18 : vector<16x4xf32>
    %55 = vector.broadcast %51 : vector<16x1xf32> to vector<16x4xf32>
    %56 = arith.addf %55, %54 : vector<16x4xf32>
    %57 = arith.mulf %50, %49 : vector<16x4xf32>
    %cst_29 = arith.constant 1.000000e+00 : f32
    %58 = vector.broadcast %cst_29 : f32 to vector<16x4xf32>
    %59 = arith.subf %58, %50 : vector<16x4xf32>
    %60 = arith.mulf %59, %23 : vector<16x4xf32>
    %61 = arith.addf %57, %60 : vector<16x4xf32>
    %62 = vector.broadcast %3 : vector<1x4xf32> to vector<16x4xf32>
    %63 = arith.mulf %56, %62 : vector<16x4xf32>
    %64 = vector.broadcast %4 : vector<1x4xf32> to vector<16x4xf32>
    %65 = arith.addf %63, %64 : vector<16x4xf32>
    %cst_30 = arith.constant 0.000000e+00 : f32
    %66 = vector.broadcast %cst_30 : f32 to vector<16x4xf32>
    %67 = arith.maximumf %65, %66 : vector<16x4xf32>
    %cst_31 = arith.constant 0.000000e+00 : f32
    %68 = vector.broadcast %cst_31 : f32 to vector<16x4xf32>
    %69 = arith.subf %68, %67 : vector<16x4xf32>
    %70 = math.exp %69 : vector<16x4xf32>
    %71 = arith.mulf %50, %49 : vector<16x4xf32>
    %cst_32 = arith.constant 1.000000e+00 : f32
    %72 = vector.broadcast %cst_32 : f32 to vector<16x4xf32>
    %73 = arith.subf %72, %50 : vector<16x4xf32>
    %74 = arith.mulf %70, %61 : vector<16x4xf32>
    %cst_33 = arith.constant 1.000000e+00 : f32
    %75 = vector.broadcast %cst_33 : f32 to vector<16x4xf32>
    %76 = arith.subf %75, %70 : vector<16x4xf32>
    %77 = vector.broadcast %5 : vector<1x4xf32> to vector<16x4xf32>
    %78 = arith.mulf %76, %77 : vector<16x4xf32>
    %79 = arith.addf %74, %78 : vector<16x4xf32>
    %80 = arith.mulf %73, %79 : vector<16x4xf32>
    %81 = arith.addf %71, %80 : vector<16x4xf32>
    %c16 = arith.constant 16 : index
    %c0_34 = arith.constant 0 : index
    %82 = vector.load %arg21[%c16, %c0_34] : memref<64x4xf32, #tpu.memory_space<vmem>>, vector<16x4xf32>
    tpu.vector_store %arg21[%c16, %c0_34], %81 {strides = array<i32>} : memref<64x4xf32, #tpu.memory_space<vmem>>, vector<16x4xf32>,
    %c16_35 = arith.constant 16 : index
    %c0_36 = arith.constant 0 : index
    %83 = vector.load %arg22[%c16_35, %c0_36] : memref<64x4xf32, #tpu.memory_space<vmem>>, vector<16x4xf32>
    tpu.vector_store %arg22[%c16_35, %c0_36], %50 {strides = array<i32>} : memref<64x4xf32, #tpu.memory_space<vmem>>, vector<16x4xf32>,
    %c16_37 = arith.constant 16 : index
    %c0_38 = arith.constant 0 : index
    %84 = vector.load %arg23[%c16_37, %c0_38] : memref<64x4xf32, #tpu.memory_space<vmem>>, vector<16x4xf32>
    tpu.vector_store %arg23[%c16_37, %c0_38], %56 {strides = array<i32>} : memref<64x4xf32, #tpu.memory_space<vmem>>, vector<16x4xf32>,
    %c2 = arith.constant 2 : index
    %c0_39 = arith.constant 0 : index
    %c0_40 = arith.constant 0 : index
    %85 = vector.load %arg2[%c2, %c0_39, %c0_40] : memref<4x16x9xf32, #tpu.memory_space<vmem>>, vector<1x16x9xf32>
    %86 = vector.shape_cast %85 : vector<1x16x9xf32> to vector<16x9xf32>
    %87 = vector.extract_strided_slice %86 {offsets = [0, 0], sizes = [16, 4], strides = [1, 1]} : vector<16x9xf32> to vector<16x4xf32>
    %88 = vector.extract_strided_slice %86 {offsets = [0, 4], sizes = [16, 4], strides = [1, 1]} : vector<16x9xf32> to vector<16x4xf32>
    %89 = vector.extract_strided_slice %86 {offsets = [0, 8], sizes = [16, 1], strides = [1, 1]} : vector<16x9xf32> to vector<16x1xf32>
    %cst_41 = arith.constant 1.000000e+00 : f32
    %90 = vector.broadcast %cst_41 : f32 to vector<16x4xf32>
    %91 = arith.subf %90, %50 : vector<16x4xf32>
    %92 = arith.mulf %91, %56 : vector<16x4xf32>
    %93 = vector.broadcast %89 : vector<16x1xf32> to vector<16x4xf32>
    %94 = arith.addf %93, %92 : vector<16x4xf32>
    %95 = arith.mulf %88, %87 : vector<16x4xf32>
    %cst_42 = arith.constant 1.000000e+00 : f32
    %96 = vector.broadcast %cst_42 : f32 to vector<16x4xf32>
    %97 = arith.subf %96, %88 : vector<16x4xf32>
    %98 = arith.mulf %97, %61 : vector<16x4xf32>
    %99 = arith.addf %95, %98 : vector<16x4xf32>
    %100 = vector.broadcast %3 : vector<1x4xf32> to vector<16x4xf32>
    %101 = arith.mulf %94, %100 : vector<16x4xf32>
    %102 = vector.broadcast %4 : vector<1x4xf32> to vector<16x4xf32>
    %103 = arith.addf %101, %102 : vector<16x4xf32>
    %cst_43 = arith.constant 0.000000e+00 : f32
    %104 = vector.broadcast %cst_43 : f32 to vector<16x4xf32>
    %105 = arith.maximumf %103, %104 : vector<16x4xf32>
    %cst_44 = arith.constant 0.000000e+00 : f32
    %106 = vector.broadcast %cst_44 : f32 to vector<16x4xf32>
    %107 = arith.subf %106, %105 : vector<16x4xf32>
    %108 = math.exp %107 : vector<16x4xf32>
    %109 = arith.mulf %88, %87 : vector<16x4xf32>
    %cst_45 = arith.constant 1.000000e+00 : f32
    %110 = vector.broadcast %cst_45 : f32 to vector<16x4xf32>
    %111 = arith.subf %110, %88 : vector<16x4xf32>
    %112 = arith.mulf %108, %99 : vector<16x4xf32>
    %cst_46 = arith.constant 1.000000e+00 : f32
    %113 = vector.broadcast %cst_46 : f32 to vector<16x4xf32>
    %114 = arith.subf %113, %108 : vector<16x4xf32>
    %115 = vector.broadcast %5 : vector<1x4xf32> to vector<16x4xf32>
    %116 = arith.mulf %114, %115 : vector<16x4xf32>
    %117 = arith.addf %112, %116 : vector<16x4xf32>
    %118 = arith.mulf %111, %117 : vector<16x4xf32>
    %119 = arith.addf %109, %118 : vector<16x4xf32>
    %c32 = arith.constant 32 : index
    %c0_47 = arith.constant 0 : index
    %120 = vector.load %arg21[%c32, %c0_47] : memref<64x4xf32, #tpu.memory_space<vmem>>, vector<16x4xf32>
    tpu.vector_store %arg21[%c32, %c0_47], %119 {strides = array<i32>} : memref<64x4xf32, #tpu.memory_space<vmem>>, vector<16x4xf32>,
    %c32_48 = arith.constant 32 : index
    %c0_49 = arith.constant 0 : index
    %121 = vector.load %arg22[%c32_48, %c0_49] : memref<64x4xf32, #tpu.memory_space<vmem>>, vector<16x4xf32>
    tpu.vector_store %arg22[%c32_48, %c0_49], %88 {strides = array<i32>} : memref<64x4xf32, #tpu.memory_space<vmem>>, vector<16x4xf32>,
    %c32_50 = arith.constant 32 : index
    %c0_51 = arith.constant 0 : index
    %122 = vector.load %arg23[%c32_50, %c0_51] : memref<64x4xf32, #tpu.memory_space<vmem>>, vector<16x4xf32>
    tpu.vector_store %arg23[%c32_50, %c0_51], %94 {strides = array<i32>} : memref<64x4xf32, #tpu.memory_space<vmem>>, vector<16x4xf32>,
    %c3 = arith.constant 3 : index
    %c0_52 = arith.constant 0 : index
    %c0_53 = arith.constant 0 : index
    %123 = vector.load %arg2[%c3, %c0_52, %c0_53] : memref<4x16x9xf32, #tpu.memory_space<vmem>>, vector<1x16x9xf32>
    %124 = vector.shape_cast %123 : vector<1x16x9xf32> to vector<16x9xf32>
    %125 = vector.extract_strided_slice %124 {offsets = [0, 0], sizes = [16, 4], strides = [1, 1]} : vector<16x9xf32> to vector<16x4xf32>
    %126 = vector.extract_strided_slice %124 {offsets = [0, 4], sizes = [16, 4], strides = [1, 1]} : vector<16x9xf32> to vector<16x4xf32>
    %127 = vector.extract_strided_slice %124 {offsets = [0, 8], sizes = [16, 1], strides = [1, 1]} : vector<16x9xf32> to vector<16x1xf32>
    %cst_54 = arith.constant 1.000000e+00 : f32
    %128 = vector.broadcast %cst_54 : f32 to vector<16x4xf32>
    %129 = arith.subf %128, %88 : vector<16x4xf32>
    %130 = arith.mulf %129, %94 : vector<16x4xf32>
    %131 = vector.broadcast %127 : vector<16x1xf32> to vector<16x4xf32>
    %132 = arith.addf %131, %130 : vector<16x4xf32>
    %133 = arith.mulf %126, %125 : vector<16x4xf32>
    %cst_55 = arith.constant 1.000000e+00 : f32
    %134 = vector.broadcast %cst_55 : f32 to vector<16x4xf32>
    %135 = arith.subf %134, %126 : vector<16x4xf32>
    %136 = arith.mulf %135, %99 : vector<16x4xf32>
    %137 = arith.addf %133, %136 : vector<16x4xf32>
    %138 = vector.broadcast %3 : vector<1x4xf32> to vector<16x4xf32>
    %139 = arith.mulf %132, %138 : vector<16x4xf32>
    %140 = vector.broadcast %4 : vector<1x4xf32> to vector<16x4xf32>
    %141 = arith.addf %139, %140 : vector<16x4xf32>
    %cst_56 = arith.constant 0.000000e+00 : f32
    %142 = vector.broadcast %cst_56 : f32 to vector<16x4xf32>
    %143 = arith.maximumf %141, %142 : vector<16x4xf32>
    %cst_57 = arith.constant 0.000000e+00 : f32
    %144 = vector.broadcast %cst_57 : f32 to vector<16x4xf32>
    %145 = arith.subf %144, %143 : vector<16x4xf32>
    %146 = math.exp %145 : vector<16x4xf32>
    %147 = arith.mulf %126, %125 : vector<16x4xf32>
    %cst_58 = arith.constant 1.000000e+00 : f32
    %148 = vector.broadcast %cst_58 : f32 to vector<16x4xf32>
    %149 = arith.subf %148, %126 : vector<16x4xf32>
    %150 = arith.mulf %146, %137 : vector<16x4xf32>
    %cst_59 = arith.constant 1.000000e+00 : f32
    %151 = vector.broadcast %cst_59 : f32 to vector<16x4xf32>
    %152 = arith.subf %151, %146 : vector<16x4xf32>
    %153 = vector.broadcast %5 : vector<1x4xf32> to vector<16x4xf32>
    %154 = arith.mulf %152, %153 : vector<16x4xf32>
    %155 = arith.addf %150, %154 : vector<16x4xf32>
    %156 = arith.mulf %149, %155 : vector<16x4xf32>
    %157 = arith.addf %147, %156 : vector<16x4xf32>
    %c48 = arith.constant 48 : index
    %c0_60 = arith.constant 0 : index
    %158 = vector.load %arg21[%c48, %c0_60] : memref<64x4xf32, #tpu.memory_space<vmem>>, vector<16x4xf32>
    tpu.vector_store %arg21[%c48, %c0_60], %157 {strides = array<i32>} : memref<64x4xf32, #tpu.memory_space<vmem>>, vector<16x4xf32>,
    %c48_61 = arith.constant 48 : index
    %c0_62 = arith.constant 0 : index
    %159 = vector.load %arg22[%c48_61, %c0_62] : memref<64x4xf32, #tpu.memory_space<vmem>>, vector<16x4xf32>
    tpu.vector_store %arg22[%c48_61, %c0_62], %126 {strides = array<i32>} : memref<64x4xf32, #tpu.memory_space<vmem>>, vector<16x4xf32>,
    %c48_63 = arith.constant 48 : index
    %c0_64 = arith.constant 0 : index
    %160 = vector.load %arg23[%c48_63, %c0_64] : memref<64x4xf32, #tpu.memory_space<vmem>>, vector<16x4xf32>
    tpu.vector_store %arg23[%c48_63, %c0_64], %132 {strides = array<i32>} : memref<64x4xf32, #tpu.memory_space<vmem>>, vector<16x4xf32>,
    %c0_65 = arith.constant 0 : index
    %c0_66 = arith.constant 0 : index
    %161 = vector.load %arg14[%c0_65, %c0_66] : memref<16x4xf32, #tpu.memory_space<vmem>>, vector<16x4xf32>
    tpu.vector_store %arg14[%c0_65, %c0_66], %137 {strides = array<i32>} : memref<16x4xf32, #tpu.memory_space<vmem>>, vector<16x4xf32>,
    %c0_67 = arith.constant 0 : index
    %c0_68 = arith.constant 0 : index
    %162 = vector.load %arg15[%c0_67, %c0_68] : memref<16x4xf32, #tpu.memory_space<vmem>>, vector<16x4xf32>
    tpu.vector_store %arg15[%c0_67, %c0_68], %126 {strides = array<i32>} : memref<16x4xf32, #tpu.memory_space<vmem>>, vector<16x4xf32>,
    %c0_69 = arith.constant 0 : index
    %c0_70 = arith.constant 0 : index
    %163 = vector.load %arg16[%c0_69, %c0_70] : memref<16x4xf32, #tpu.memory_space<vmem>>, vector<16x4xf32>
    tpu.vector_store %arg16[%c0_69, %c0_70], %132 {strides = array<i32>} : memref<16x4xf32, #tpu.memory_space<vmem>>, vector<16x4xf32>,
    %c0_71 = arith.constant 0 : index
    %c0_72 = arith.constant 0 : index
    %164 = vector.load %arg21[%c0_71, %c0_72] : memref<64x4xf32, #tpu.memory_space<vmem>>, vector<64x4xf32>
    %c0_73 = arith.constant 0 : index
    %c0_74 = arith.constant 0 : index
    %165 = vector.load %arg22[%c0_73, %c0_74] : memref<64x4xf32, #tpu.memory_space<vmem>>, vector<64x4xf32>
    %166 = tpu.concatenate %164, %165 in 1 : vector<64x4xf32>, vector<64x4xf32> -> vector<64x8xf32>
    %c0_75 = arith.constant 0 : index
    %c0_76 = arith.constant 0 : index
    %167 = vector.load %arg5[%c0_75, %c0_76] : memref<8x384xf32, #tpu.memory_space<vmem>>, vector<8x384xf32>
    %cst_77 = arith.constant dense<0.000000e+00> : vector<64x384xf32>
    %168 = tpu.matmul %166, %167, %cst_77 {dimension_numbers = #tpu.dot_dimension_numbers<[1], [0], [0], [1], [0, 0, 1, 1], [], []>} : vector<64x8xf32>, vector<8x384xf32>, vector<64x384xf32> -> vector<64x384xf32>
    %c0_78 = arith.constant 0 : index
    %c0_79 = arith.constant 0 : index
    %169 = vector.load %arg6[%c0_78, %c0_79] : memref<1x384xf32, #tpu.memory_space<vmem>>, vector<1x384xf32>
    %170 = vector.broadcast %169 : vector<1x384xf32> to vector<64x384xf32>
    %171 = arith.addf %168, %170 : vector<64x384xf32>
    %c0_80 = arith.constant 0 : index
    %c0_81 = arith.constant 0 : index
    %172 = vector.load %arg24[%c0_80, %c0_81] : memref<64x384xf32, #tpu.memory_space<vmem>>, vector<64x384xf32>
    tpu.vector_store %arg24[%c0_80, %c0_81], %171 {strides = array<i32>} : memref<64x384xf32, #tpu.memory_space<vmem>>, vector<64x384xf32>,
    %c0_82 = arith.constant 0 : index
    %c0_83 = arith.constant 0 : index
    %173 = vector.load %arg23[%c0_82, %c0_83] : memref<64x4xf32, #tpu.memory_space<vmem>>, vector<64x4xf32>
    %c0_84 = arith.constant 0 : index
    %c0_85 = arith.constant 0 : index
    %174 = vector.load %arg7[%c0_84, %c0_85] : memref<4x128xf32, #tpu.memory_space<vmem>>, vector<4x128xf32>
    %cst_86 = arith.constant dense<0.000000e+00> : vector<64x128xf32>
    %175 = tpu.matmul %173, %174, %cst_86 {dimension_numbers = #tpu.dot_dimension_numbers<[1], [0], [0], [1], [0, 0, 1, 1], [], []>} : vector<64x4xf32>, vector<4x128xf32>, vector<64x128xf32> -> vector<64x128xf32>
    %c0_87 = arith.constant 0 : index
    %c0_88 = arith.constant 0 : index
    %176 = vector.load %arg8[%c0_87, %c0_88] : memref<1x128xf32, #tpu.memory_space<vmem>>, vector<1x128xf32>
    %177 = vector.broadcast %176 : vector<1x128xf32> to vector<64x128xf32>
    %178 = arith.addf %175, %177 : vector<64x128xf32>
    %cst_89 = arith.constant 0.000000e+00 : f32
    %179 = vector.broadcast %cst_89 : f32 to vector<64x128xf32>
    %180 = arith.maximumf %178, %179 : vector<64x128xf32>
    %cst_90 = arith.constant 0.000000e+00 : f32
    %181 = vector.broadcast %cst_90 : f32 to vector<64x128xf32>
    %182 = arith.subf %181, %180 : vector<64x128xf32>
    %183 = math.exp %182 : vector<64x128xf32>
    %c0_91 = arith.constant 0 : index
    %c0_92 = arith.constant 0 : index
    %184 = vector.load %arg25[%c0_91, %c0_92] : memref<64x128xf32, #tpu.memory_space<vmem>>, vector<64x128xf32>
    tpu.vector_store %arg25[%c0_91, %c0_92], %183 {strides = array<i32>} : memref<64x128xf32, #tpu.memory_space<vmem>>, vector<64x128xf32>,
    %c0_93 = arith.constant 0 : index
    %c0_94 = arith.constant 0 : index
    %185 = vector.load %arg9[%c0_93, %c0_94] : memref<128x256xf32, #tpu.memory_space<vmem>>, vector<128x256xf32>
    %c0_95 = arith.constant 0 : index
    %c0_96 = arith.constant 0 : index
    %186 = vector.load %arg10[%c0_95, %c0_96] : memref<128x128xf32, #tpu.memory_space<vmem>>, vector<128x128xf32>
    %c0_97 = arith.constant 0 : index
    %c0_98 = arith.constant 0 : index
    %187 = vector.load %arg17[%c0_97, %c0_98] : memref<16x128xf32, #tpu.memory_space<vmem>>, vector<16x128xf32>
    %c0_99 = arith.constant 0 : index
    %c0_100 = arith.constant 0 : index
    %188 = vector.load %arg24[%c0_99, %c0_100] : memref<64x384xf32, #tpu.memory_space<vmem>>, vector<16x384xf32>
    %c0_101 = arith.constant 0 : index
    %c0_102 = arith.constant 0 : index
    %189 = vector.load %arg25[%c0_101, %c0_102] : memref<64x128xf32, #tpu.memory_space<vmem>>, vector<16x128xf32>
    %190 = arith.mulf %189, %187 : vector<16x128xf32>
    %191 = vector.extract_strided_slice %188 {offsets = [0, 0], sizes = [16, 256], strides = [1, 1]} : vector<16x384xf32> to vector<16x256xf32>
    %cst_103 = arith.constant dense<0.000000e+00> : vector<16x256xf32>
    %192 = tpu.matmul %190, %185, %cst_103 {dimension_numbers = #tpu.dot_dimension_numbers<[1], [0], [0], [1], [0, 0, 1, 1], [], []>} : vector<16x128xf32>, vector<128x256xf32>, vector<16x256xf32> -> vector<16x256xf32>
    %193 = arith.addf %191, %192 : vector<16x256xf32>
    %194 = arith.negf %193 : vector<16x256xf32>
    %195 = math.exp %194 : vector<16x256xf32>
    %cst_104 = arith.constant 1.000000e+00 : f32
    %196 = vector.broadcast %cst_104 : f32 to vector<16x256xf32>
    %197 = arith.addf %196, %195 : vector<16x256xf32>
    %198 = arith.divf %196, %197 : vector<16x256xf32>
    %199 = vector.extract_strided_slice %198 {offsets = [0, 0], sizes = [16, 128], strides = [1, 1]} : vector<16x256xf32> to vector<16x128xf32>
    %200 = vector.extract_strided_slice %198 {offsets = [0, 128], sizes = [16, 128], strides = [1, 1]} : vector<16x256xf32> to vector<16x128xf32>
    %201 = vector.extract_strided_slice %188 {offsets = [0, 256], sizes = [16, 128], strides = [1, 1]} : vector<16x384xf32> to vector<16x128xf32>
    %202 = arith.mulf %200, %190 : vector<16x128xf32>
    %cst_105 = arith.constant dense<0.000000e+00> : vector<16x128xf32>
    %203 = tpu.matmul %202, %186, %cst_105 {dimension_numbers = #tpu.dot_dimension_numbers<[1], [0], [0], [1], [0, 0, 1, 1], [], []>} : vector<16x128xf32>, vector<128x128xf32>, vector<16x128xf32> -> vector<16x128xf32>
    %204 = arith.addf %201, %203 : vector<16x128xf32>
    %205 = math.tanh %204 : vector<16x128xf32>
    %cst_106 = arith.constant 1.000000e+00 : f32
    %206 = vector.broadcast %cst_106 : f32 to vector<16x128xf32>
    %207 = arith.subf %206, %199 : vector<16x128xf32>
    %208 = arith.mulf %207, %190 : vector<16x128xf32>
    %209 = arith.mulf %199, %205 : vector<16x128xf32>
    %210 = arith.addf %208, %209 : vector<16x128xf32>
    %c0_107 = arith.constant 0 : index
    %c0_108 = arith.constant 0 : index
    %c0_109 = arith.constant 0 : index
    %211 = vector.load %arg26[%c0_107, %c0_108, %c0_109] : memref<4x16x128xf32, #tpu.memory_space<vmem>>, vector<1x16x128xf32>
    %212 = vector.shape_cast %211 : vector<1x16x128xf32> to vector<16x128xf32>
    %213 = vector.shape_cast %210 : vector<16x128xf32> to vector<1x16x128xf32>
    tpu.vector_store %arg26[%c0_107, %c0_108, %c0_109], %213 {strides = array<i32>} : memref<4x16x128xf32, #tpu.memory_space<vmem>>, vector<1x16x128xf32>,
    %c16_110 = arith.constant 16 : index
    %c0_111 = arith.constant 0 : index
    %214 = vector.load %arg24[%c16_110, %c0_111] : memref<64x384xf32, #tpu.memory_space<vmem>>, vector<16x384xf32>
    %c16_112 = arith.constant 16 : index
    %c0_113 = arith.constant 0 : index
    %215 = vector.load %arg25[%c16_112, %c0_113] : memref<64x128xf32, #tpu.memory_space<vmem>>, vector<16x128xf32>
    %216 = arith.mulf %215, %210 : vector<16x128xf32>
    %217 = vector.extract_strided_slice %214 {offsets = [0, 0], sizes = [16, 256], strides = [1, 1]} : vector<16x384xf32> to vector<16x256xf32>
    %cst_114 = arith.constant dense<0.000000e+00> : vector<16x256xf32>
    %218 = tpu.matmul %216, %185, %cst_114 {dimension_numbers = #tpu.dot_dimension_numbers<[1], [0], [0], [1], [0, 0, 1, 1], [], []>} : vector<16x128xf32>, vector<128x256xf32>, vector<16x256xf32> -> vector<16x256xf32>
    %219 = arith.addf %217, %218 : vector<16x256xf32>
    %220 = arith.negf %219 : vector<16x256xf32>
    %221 = math.exp %220 : vector<16x256xf32>
    %cst_115 = arith.constant 1.000000e+00 : f32
    %222 = vector.broadcast %cst_115 : f32 to vector<16x256xf32>
    %223 = arith.addf %222, %221 : vector<16x256xf32>
    %224 = arith.divf %222, %223 : vector<16x256xf32>
    %225 = vector.extract_strided_slice %224 {offsets = [0, 0], sizes = [16, 128], strides = [1, 1]} : vector<16x256xf32> to vector<16x128xf32>
    %226 = vector.extract_strided_slice %224 {offsets = [0, 128], sizes = [16, 128], strides = [1, 1]} : vector<16x256xf32> to vector<16x128xf32>
    %227 = vector.extract_strided_slice %214 {offsets = [0, 256], sizes = [16, 128], strides = [1, 1]} : vector<16x384xf32> to vector<16x128xf32>
    %228 = arith.mulf %226, %216 : vector<16x128xf32>
    %cst_116 = arith.constant dense<0.000000e+00> : vector<16x128xf32>
    %229 = tpu.matmul %228, %186, %cst_116 {dimension_numbers = #tpu.dot_dimension_numbers<[1], [0], [0], [1], [0, 0, 1, 1], [], []>} : vector<16x128xf32>, vector<128x128xf32>, vector<16x128xf32> -> vector<16x128xf32>
    %230 = arith.addf %227, %229 : vector<16x128xf32>
    %231 = math.tanh %230 : vector<16x128xf32>
    %cst_117 = arith.constant 1.000000e+00 : f32
    %232 = vector.broadcast %cst_117 : f32 to vector<16x128xf32>
    %233 = arith.subf %232, %225 : vector<16x128xf32>
    %234 = arith.mulf %233, %216 : vector<16x128xf32>
    %235 = arith.mulf %225, %231 : vector<16x128xf32>
    %236 = arith.addf %234, %235 : vector<16x128xf32>
    %c1_118 = arith.constant 1 : index
    %c0_119 = arith.constant 0 : index
    %c0_120 = arith.constant 0 : index
    %237 = vector.load %arg26[%c1_118, %c0_119, %c0_120] : memref<4x16x128xf32, #tpu.memory_space<vmem>>, vector<1x16x128xf32>
    %238 = vector.shape_cast %237 : vector<1x16x128xf32> to vector<16x128xf32>
    %239 = vector.shape_cast %236 : vector<16x128xf32> to vector<1x16x128xf32>
    tpu.vector_store %arg26[%c1_118, %c0_119, %c0_120], %239 {strides = array<i32>} : memref<4x16x128xf32, #tpu.memory_space<vmem>>, vector<1x16x128xf32>,
    %c32_121 = arith.constant 32 : index
    %c0_122 = arith.constant 0 : index
    %240 = vector.load %arg24[%c32_121, %c0_122] : memref<64x384xf32, #tpu.memory_space<vmem>>, vector<16x384xf32>
    %c32_123 = arith.constant 32 : index
    %c0_124 = arith.constant 0 : index
    %241 = vector.load %arg25[%c32_123, %c0_124] : memref<64x128xf32, #tpu.memory_space<vmem>>, vector<16x128xf32>
    %242 = arith.mulf %241, %236 : vector<16x128xf32>
    %243 = vector.extract_strided_slice %240 {offsets = [0, 0], sizes = [16, 256], strides = [1, 1]} : vector<16x384xf32> to vector<16x256xf32>
    %cst_125 = arith.constant dense<0.000000e+00> : vector<16x256xf32>
    %244 = tpu.matmul %242, %185, %cst_125 {dimension_numbers = #tpu.dot_dimension_numbers<[1], [0], [0], [1], [0, 0, 1, 1], [], []>} : vector<16x128xf32>, vector<128x256xf32>, vector<16x256xf32> -> vector<16x256xf32>
    %245 = arith.addf %243, %244 : vector<16x256xf32>
    %246 = arith.negf %245 : vector<16x256xf32>
    %247 = math.exp %246 : vector<16x256xf32>
    %cst_126 = arith.constant 1.000000e+00 : f32
    %248 = vector.broadcast %cst_126 : f32 to vector<16x256xf32>
    %249 = arith.addf %248, %247 : vector<16x256xf32>
    %250 = arith.divf %248, %249 : vector<16x256xf32>
    %251 = vector.extract_strided_slice %250 {offsets = [0, 0], sizes = [16, 128], strides = [1, 1]} : vector<16x256xf32> to vector<16x128xf32>
    %252 = vector.extract_strided_slice %250 {offsets = [0, 128], sizes = [16, 128], strides = [1, 1]} : vector<16x256xf32> to vector<16x128xf32>
    %253 = vector.extract_strided_slice %240 {offsets = [0, 256], sizes = [16, 128], strides = [1, 1]} : vector<16x384xf32> to vector<16x128xf32>
    %254 = arith.mulf %252, %242 : vector<16x128xf32>
    %cst_127 = arith.constant dense<0.000000e+00> : vector<16x128xf32>
    %255 = tpu.matmul %254, %186, %cst_127 {dimension_numbers = #tpu.dot_dimension_numbers<[1], [0], [0], [1], [0, 0, 1, 1], [], []>} : vector<16x128xf32>, vector<128x128xf32>, vector<16x128xf32> -> vector<16x128xf32>
    %256 = arith.addf %253, %255 : vector<16x128xf32>
    %257 = math.tanh %256 : vector<16x128xf32>
    %cst_128 = arith.constant 1.000000e+00 : f32
    %258 = vector.broadcast %cst_128 : f32 to vector<16x128xf32>
    %259 = arith.subf %258, %251 : vector<16x128xf32>
    %260 = arith.mulf %259, %242 : vector<16x128xf32>
    %261 = arith.mulf %251, %257 : vector<16x128xf32>
    %262 = arith.addf %260, %261 : vector<16x128xf32>
    %c2_129 = arith.constant 2 : index
    %c0_130 = arith.constant 0 : index
    %c0_131 = arith.constant 0 : index
    %263 = vector.load %arg26[%c2_129, %c0_130, %c0_131] : memref<4x16x128xf32, #tpu.memory_space<vmem>>, vector<1x16x128xf32>
    %264 = vector.shape_cast %263 : vector<1x16x128xf32> to vector<16x128xf32>
    %265 = vector.shape_cast %262 : vector<16x128xf32> to vector<1x16x128xf32>
    tpu.vector_store %arg26[%c2_129, %c0_130, %c0_131], %265 {strides = array<i32>} : memref<4x16x128xf32, #tpu.memory_space<vmem>>, vector<1x16x128xf32>,
    %c48_132 = arith.constant 48 : index
    %c0_133 = arith.constant 0 : index
    %266 = vector.load %arg24[%c48_132, %c0_133] : memref<64x384xf32, #tpu.memory_space<vmem>>, vector<16x384xf32>
    %c48_134 = arith.constant 48 : index
    %c0_135 = arith.constant 0 : index
    %267 = vector.load %arg25[%c48_134, %c0_135] : memref<64x128xf32, #tpu.memory_space<vmem>>, vector<16x128xf32>
    %268 = arith.mulf %267, %262 : vector<16x128xf32>
    %269 = vector.extract_strided_slice %266 {offsets = [0, 0], sizes = [16, 256], strides = [1, 1]} : vector<16x384xf32> to vector<16x256xf32>
    %cst_136 = arith.constant dense<0.000000e+00> : vector<16x256xf32>
    %270 = tpu.matmul %268, %185, %cst_136 {dimension_numbers = #tpu.dot_dimension_numbers<[1], [0], [0], [1], [0, 0, 1, 1], [], []>} : vector<16x128xf32>, vector<128x256xf32>, vector<16x256xf32> -> vector<16x256xf32>
    %271 = arith.addf %269, %270 : vector<16x256xf32>
    %272 = arith.negf %271 : vector<16x256xf32>
    %273 = math.exp %272 : vector<16x256xf32>
    %cst_137 = arith.constant 1.000000e+00 : f32
    %274 = vector.broadcast %cst_137 : f32 to vector<16x256xf32>
    %275 = arith.addf %274, %273 : vector<16x256xf32>
    %276 = arith.divf %274, %275 : vector<16x256xf32>
    %277 = vector.extract_strided_slice %276 {offsets = [0, 0], sizes = [16, 128], strides = [1, 1]} : vector<16x256xf32> to vector<16x128xf32>
    %278 = vector.extract_strided_slice %276 {offsets = [0, 128], sizes = [16, 128], strides = [1, 1]} : vector<16x256xf32> to vector<16x128xf32>
    %279 = vector.extract_strided_slice %266 {offsets = [0, 256], sizes = [16, 128], strides = [1, 1]} : vector<16x384xf32> to vector<16x128xf32>
    %280 = arith.mulf %278, %268 : vector<16x128xf32>
    %cst_138 = arith.constant dense<0.000000e+00> : vector<16x128xf32>
    %281 = tpu.matmul %280, %186, %cst_138 {dimension_numbers = #tpu.dot_dimension_numbers<[1], [0], [0], [1], [0, 0, 1, 1], [], []>} : vector<16x128xf32>, vector<128x128xf32>, vector<16x128xf32> -> vector<16x128xf32>
    %282 = arith.addf %279, %281 : vector<16x128xf32>
    %283 = math.tanh %282 : vector<16x128xf32>
    %cst_139 = arith.constant 1.000000e+00 : f32
    %284 = vector.broadcast %cst_139 : f32 to vector<16x128xf32>
    %285 = arith.subf %284, %277 : vector<16x128xf32>
    %286 = arith.mulf %285, %268 : vector<16x128xf32>
    %287 = arith.mulf %277, %283 : vector<16x128xf32>
    %288 = arith.addf %286, %287 : vector<16x128xf32>
    %c3_140 = arith.constant 3 : index
    %c0_141 = arith.constant 0 : index
    %c0_142 = arith.constant 0 : index
    %289 = vector.load %arg26[%c3_140, %c0_141, %c0_142] : memref<4x16x128xf32, #tpu.memory_space<vmem>>, vector<1x16x128xf32>
    %290 = vector.shape_cast %289 : vector<1x16x128xf32> to vector<16x128xf32>
    %291 = vector.shape_cast %288 : vector<16x128xf32> to vector<1x16x128xf32>
    tpu.vector_store %arg26[%c3_140, %c0_141, %c0_142], %291 {strides = array<i32>} : memref<4x16x128xf32, #tpu.memory_space<vmem>>, vector<1x16x128xf32>,
    %c0_143 = arith.constant 0 : index
    %c0_144 = arith.constant 0 : index
    %292 = vector.load %arg17[%c0_143, %c0_144] : memref<16x128xf32, #tpu.memory_space<vmem>>, vector<16x128xf32>
    tpu.vector_store %arg17[%c0_143, %c0_144], %288 {strides = array<i32>} : memref<16x128xf32, #tpu.memory_space<vmem>>, vector<16x128xf32>,
    %c0_145 = arith.constant 0 : index
    %c0_146 = arith.constant 0 : index
    %c0_147 = arith.constant 0 : index
    %293 = vector.load %arg26[%c0_145, %c0_146, %c0_147] : memref<4x16x128xf32, #tpu.memory_space<vmem>>, vector<4x16x128xf32>
    %c0_148 = arith.constant 0 : index
    %c0_149 = arith.constant 0 : index
    %294 = vector.load %arg12[%c0_148, %c0_149] : memref<1x128xf32, #tpu.memory_space<vmem>>, vector<1x128xf32>
    %295 = vector.shape_cast %294 : vector<1x128xf32> to vector<1x1x128xf32>
    %296 = vector.broadcast %295 : vector<1x1x128xf32> to vector<4x16x128xf32>
    %297 = arith.mulf %293, %296 : vector<4x16x128xf32>
    %cst_150 = arith.constant dense<0.000000e+00> : vector<4x16xf32>
    %298 = vector.multi_reduction <add>, %297, %cst_150 [2] : vector<4x16x128xf32> to vector<4x16xf32>
    %299 = vector.shape_cast %298 : vector<4x16xf32> to vector<4x16x1xf32>
    %cst_151 = arith.constant 0.176776692 : f32
    %300 = vector.broadcast %cst_151 : f32 to vector<4x16x1xf32>
    %301 = arith.mulf %299, %300 : vector<4x16x1xf32>
    %c0_152 = arith.constant 0 : index
    %c0_153 = arith.constant 0 : index
    %302 = vector.load %arg18[%c0_152, %c0_153] : memref<16x1xf32, #tpu.memory_space<vmem>>, vector<16x1xf32>
    %cst_154 = arith.constant dense<0xFF800000> : vector<16x1xf32>
    %303 = vector.multi_reduction <maximumf>, %301, %cst_154 [0] : vector<4x16x1xf32> to vector<16x1xf32>
    %304 = arith.maximumf %302, %303 : vector<16x1xf32>
    %305 = arith.subf %302, %304 : vector<16x1xf32>
    %306 = math.exp %305 : vector<16x1xf32>
    %307 = vector.shape_cast %304 : vector<16x1xf32> to vector<1x16x1xf32>
    %308 = vector.broadcast %307 : vector<1x16x1xf32> to vector<4x16x1xf32>
    %309 = arith.subf %301, %308 : vector<4x16x1xf32>
    %310 = math.exp %309 : vector<4x16x1xf32>
    %c0_155 = arith.constant 0 : index
    %c0_156 = arith.constant 0 : index
    %311 = vector.load %arg19[%c0_155, %c0_156] : memref<16x1xf32, #tpu.memory_space<vmem>>, vector<16x1xf32>
    %312 = arith.mulf %306, %311 : vector<16x1xf32>
    %cst_157 = arith.constant dense<0.000000e+00> : vector<16x1xf32>
    %313 = vector.multi_reduction <add>, %310, %cst_157 [0] : vector<4x16x1xf32> to vector<16x1xf32>
    %314 = arith.addf %312, %313 : vector<16x1xf32>
    %c0_158 = arith.constant 0 : index
    %c0_159 = arith.constant 0 : index
    %315 = vector.load %arg19[%c0_158, %c0_159] : memref<16x1xf32, #tpu.memory_space<vmem>>, vector<16x1xf32>
    tpu.vector_store %arg19[%c0_158, %c0_159], %314 {strides = array<i32>} : memref<16x1xf32, #tpu.memory_space<vmem>>, vector<16x1xf32>,
    %c0_160 = arith.constant 0 : index
    %c0_161 = arith.constant 0 : index
    %316 = vector.load %arg20[%c0_160, %c0_161] : memref<16x128xf32, #tpu.memory_space<vmem>>, vector<16x128xf32>
    %317 = vector.broadcast %306 : vector<16x1xf32> to vector<16x128xf32>
    %318 = arith.mulf %317, %316 : vector<16x128xf32>
    %319 = vector.broadcast %310 : vector<4x16x1xf32> to vector<4x16x128xf32>
    %320 = arith.mulf %319, %293 : vector<4x16x128xf32>
    %cst_162 = arith.constant dense<0.000000e+00> : vector<16x128xf32>
    %321 = vector.multi_reduction <add>, %320, %cst_162 [0] : vector<4x16x128xf32> to vector<16x128xf32>
    %322 = arith.addf %318, %321 : vector<16x128xf32>
    %c0_163 = arith.constant 0 : index
    %c0_164 = arith.constant 0 : index
    %323 = vector.load %arg20[%c0_163, %c0_164] : memref<16x128xf32, #tpu.memory_space<vmem>>, vector<16x128xf32>
    tpu.vector_store %arg20[%c0_163, %c0_164], %322 {strides = array<i32>} : memref<16x128xf32, #tpu.memory_space<vmem>>, vector<16x128xf32>,
    %c0_165 = arith.constant 0 : index
    %c0_166 = arith.constant 0 : index
    %324 = vector.load %arg18[%c0_165, %c0_166] : memref<16x1xf32, #tpu.memory_space<vmem>>, vector<16x1xf32>
    tpu.vector_store %arg18[%c0_165, %c0_166], %304 {strides = array<i32>} : memref<16x1xf32, #tpu.memory_space<vmem>>, vector<16x1xf32>,
    %c1_i32 = arith.constant 1 : i32
    %325 = arith.cmpi eq, %arg1, %c1_i32 : i32
    %326 = arith.extui %325 : i1 to i32
    %c0_i32_167 = arith.constant 0 : i32
    %327 = arith.cmpi ne, %326, %c0_i32_167 : i32
    scf.if %327 {
      %c0_168 = arith.constant 0 : index
      %c0_169 = arith.constant 0 : index
      %328 = vector.load %arg20[%c0_168, %c0_169] : memref<16x128xf32, #tpu.memory_space<vmem>>, vector<16x128xf32>
      %c0_170 = arith.constant 0 : index
      %c0_171 = arith.constant 0 : index
      %329 = vector.load %arg19[%c0_170, %c0_171] : memref<16x1xf32, #tpu.memory_space<vmem>>, vector<16x1xf32>
      %330 = vector.broadcast %329 : vector<16x1xf32> to vector<16x128xf32>
      %331 = arith.divf %328, %330 : vector<16x128xf32>
      %c0_172 = arith.constant 0 : index
      %c0_173 = arith.constant 0 : index
      %332 = vector.load %arg13[%c0_172, %c0_173] : memref<16x128xf32, #tpu.memory_space<vmem>>, vector<16x128xf32>
      tpu.vector_store %arg13[%c0_172, %c0_173], %331 {strides = array<i32>} : memref<16x128xf32, #tpu.memory_space<vmem>>, vector<16x128xf32>,
    } else {
    }
    return
  }
  func.func @transform_0(%arg0: i32, %arg1: i32) -> (i32, i32, i32) {
    %c0_i32 = arith.constant 0 : i32
    %c0_i32_0 = arith.constant 0 : i32
    return %arg1, %arg0, %c0_i32 : i32, i32, i32
  }
  func.func @transform_1(%arg0: i32, %arg1: i32) -> (i32, i32) {
    %c0_i32 = arith.constant 0 : i32
    %c0_i32_0 = arith.constant 0 : i32
    %c0_i32_1 = arith.constant 0 : i32
    return %c0_i32, %c0_i32_0 : i32, i32
  }
  func.func @transform_2(%arg0: i32, %arg1: i32) -> (i32, i32) {
    %c0_i32 = arith.constant 0 : i32
    %c0_i32_0 = arith.constant 0 : i32
    %c0_i32_1 = arith.constant 0 : i32
    return %c0_i32, %c0_i32_0 : i32, i32
  }
  func.func @transform_3(%arg0: i32, %arg1: i32) -> (i32, i32) {
    %c0_i32 = arith.constant 0 : i32
    %c0_i32_0 = arith.constant 0 : i32
    %c0_i32_1 = arith.constant 0 : i32
    return %c0_i32, %c0_i32_0 : i32, i32
  }
  func.func @transform_4(%arg0: i32, %arg1: i32) -> (i32, i32) {
    %c0_i32 = arith.constant 0 : i32
    %c0_i32_0 = arith.constant 0 : i32
    %c0_i32_1 = arith.constant 0 : i32
    return %c0_i32, %c0_i32_0 : i32, i32
  }
  func.func @transform_5(%arg0: i32, %arg1: i32) -> (i32, i32) {
    %c0_i32 = arith.constant 0 : i32
    %c0_i32_0 = arith.constant 0 : i32
    %c0_i32_1 = arith.constant 0 : i32
    return %c0_i32, %c0_i32_0 : i32, i32
  }
  func.func @transform_6(%arg0: i32, %arg1: i32) -> (i32, i32) {
    %c0_i32 = arith.constant 0 : i32
    %c0_i32_0 = arith.constant 0 : i32
    %c0_i32_1 = arith.constant 0 : i32
    return %c0_i32, %c0_i32_0 : i32, i32
  }
  func.func @transform_7(%arg0: i32, %arg1: i32) -> (i32, i32) {
    %c0_i32 = arith.constant 0 : i32
    %c0_i32_0 = arith.constant 0 : i32
    %c0_i32_1 = arith.constant 0 : i32
    return %c0_i32, %c0_i32_0 : i32, i32
  }
  func.func @transform_8(%arg0: i32, %arg1: i32) -> (i32, i32) {
    %c0_i32 = arith.constant 0 : i32
    %c0_i32_0 = arith.constant 0 : i32
    %c0_i32_1 = arith.constant 0 : i32
    return %c0_i32, %c0_i32_0 : i32, i32
  }
  func.func @transform_9(%arg0: i32, %arg1: i32) -> (i32, i32) {
    %c0_i32 = arith.constant 0 : i32
    %c0_i32_0 = arith.constant 0 : i32
    %c0_i32_1 = arith.constant 0 : i32
    return %c0_i32, %c0_i32_0 : i32, i32
  }
  func.func @transform_10(%arg0: i32, %arg1: i32) -> (i32, i32) {
    %c0_i32 = arith.constant 0 : i32
    %c0_i32_0 = arith.constant 0 : i32
    %c0_i32_1 = arith.constant 0 : i32
    return %c0_i32, %c0_i32_0 : i32, i32
  }
  func.func @transform_11(%arg0: i32, %arg1: i32) -> (i32, i32) {
    %c0_i32 = arith.constant 0 : i32
    %c0_i32_0 = arith.constant 0 : i32
    return %arg0, %c0_i32 : i32, i32
  }
}

</mosaic_0001>

<bundles_post_ra>
// kernel: grud_encoder_forward.1
= control target key start
LH: loop header
LB: loop body
LE: loop exit
PB: predicated region body
PF: predicated region fallthrough
CT: control target
= control target key end

     0   :  { %16 = vsyncpa [#allocation16], 0  ;;  %s3466_s17 = smov 0   ;;  %s3468_s18 = smov 0   ;;  %s4319_s0 = inlined_call_operand.vmem [shape: f32[8,16,9], index: 0, kind: input, shape index: {}]   ;;  %s4320_s1 = inlined_call_operand.vmem [shape: f32[1,4], index: 1, kind: input, shape index: {}]   ;;  %s4321_s2 = inlined_call_operand.vmem [shape: f32[1,4], index: 2, kind: input, shape index: {}]   ;;  %s4322_s3 = inlined_call_operand.vmem [shape: f32[8,384], index: 3, kind: input, shape index: {}]   ;;  %s4323_s4 = inlined_call_operand.vmem [shape: f32[1,384], index: 4, kind: input, shape index: {}]   ;;  %s4324_s5 = inlined_call_operand.vmem [shape: f32[4,128], index: 5, kind: input, shape index: {}]   ;;  %s4325_s6 = inlined_call_operand.vmem [shape: f32[1,128], index: 6, kind: input, shape index: {}]   ;;  %s4326_s7 = inlined_call_operand.vmem [shape: f32[128,256], index: 7, kind: input, shape index: {}]   ;;  %s4327_s8 = inlined_call_operand.vmem [shape: f32[128,128], index: 8, kind: input, shape index: {}]   ;;  %s4328_s9 = inlined_call_operand.vmem [shape: f32[1,4], index: 9, kind: input, shape index: {}]   ;;  %s4329_s10 = inlined_call_operand.vmem [shape: f32[1,128], index: 10, kind: input, shape index: {}]   ;;  %s4330_s11 = inlined_call_operand.hbm [shape: f32[16,128], index: 11, kind: output, shape index: {}]  }
   0x1   :  { %s3470_s19 = smov 0  }
   0x2 LB: > { %s2529_s20 = sadd.s32 4294967295, %s3392_s19   ;;  %s31_s21 = sadd.s32 1, %s3388_s18  ;;  %s3392_s19 = sphi %s3470_s19, %s22_s19   ;;  %s3388_s18 = sphi %s3468_s18, %s4333_s18   ;;  %s3384_s17 = sphi %s3466_s17, %s4332_s17  }
   0x3   : > { %p32_p0 = scmp.ge.s32.totalorder %s31_s21, 2  ;;  %p2532_p1 = scmp.ge.s32.totalorder %s3392_s19, 1 }
   0x4   : > { %p359_p2 = scmp.lt.s32.totalorder %s3392_s19, 3 }
   0x5   : > { %s4335_s21 = smov (%p32_p0, %s31_s21), 0 }
   0x6   : > { %p360_p3 = pnand %p2532_p1, %p359_p2 }
   0x7   : > { %s2533_s22 = sshll.u32 (!%p360_p3), %s3384_s17, 2  ;;  %p2536_p5 = scmp.ne.s32.totalorder (!%p360_p3), %s3384_s17, 0 }
   0x8   : > { %363 = sbr.rel (%p360_p3) target bundleno = 3175 (0xc67), region = 64  ;;  %p401_p4 = scmp.lt.s32.totalorder (!%p360_p3), %s2533_s22, 7 }
   0xf   : > { %s4337_s22 = smov (!%p401_p4, %s2533_s22), 7  ;;  %415 = sbr.rel (%p2536_p5) target bundleno = 24 (0x18), region = 68 }
  0x10   : > { %s2594_s23 = sshll.u32 %s4337_s22, 4  ;;  %vm420_vm0 = vcmask (!%p2536_p5), 7168   ;;  %vm425_vm1 = vcmask (!%p2536_p5), 31744   ;;  %v3394_v2 = vmov (!%p2536_p5), 0.0   ;;  %v3395_v3 = vmov (!%p2536_p5), -inf  }
  0x11   : > { %s3491_s26 = scalar_lea.vmem %s4319_s0, %s2594_s23  ;;  %416 = vst [vmem:[#allocation5] sm:$0xff] (!%p2536_p5), %v3394_v2  ;;  %417 = vst [vmem:[#allocation5 + $0x8] sm:$0xff] (!%p2536_p5), %v3394_v2  ;;  %v3396_v4 = vmov (!%p2536_p5), 1.0  }
  0x12   : > { %v430_v0 = vld [vmem:[%s3491_s26] sm:$0xff] (!%p2536_p5)  ;;  %v431_v1 = vld [vmem:[%s3491_s26 + $0x8] sm:$0xff] (!%p2536_p5)  ;;  %418 = vst [vmem:[#allocation8] sm:$0xff] (!%p2536_p5), %v3394_v2  ;;  %419 = vst [vmem:[#allocation8 + $0x8] sm:$0xff] (!%p2536_p5), %v3394_v2 }
  0x13   : > { %421 = vst.msk [vmem:[#allocation6] sm:$0xff] (!%p2536_p5), %vm420_vm0, %v3395_v3  ;;  %422 = vst.msk [vmem:[#allocation6 + $0x8] sm:$0xff] (!%p2536_p5), %vm420_vm0, %v3395_v3 }
  0x14   : > { %423 = vst.msk [vmem:[#allocation7] sm:$0xff] (!%p2536_p5), %vm420_vm0, %v3394_v2  ;;  %424 = vst.msk [vmem:[#allocation7 + $0x8] sm:$0xff] (!%p2536_p5), %vm420_vm0, %v3394_v2 }
  0x15   : > { %426 = vst.msk [vmem:[#allocation4] sm:$0xff] (!%p2536_p5), %vm425_vm1, %v3394_v2  ;;  %427 = vst.msk [vmem:[#allocation4 + $0x8] sm:$0xff] (!%p2536_p5), %vm425_vm1, %v3394_v2 }
  0x16   : > { %432 = vst.msk [vmem:[#allocation2] sm:$0xff] %vm425_vm1, %v430_v0  ;;  %433 = vst.msk [vmem:[#allocation2 + $0x8] sm:$0xff] %vm425_vm1, %v431_v1 }
  0x17   : > { %428 = vst.msk [vmem:[#allocation3] sm:$0xff] %vm425_vm1, %v3396_v4  ;;  %429 = vst.msk [vmem:[#allocation3 + $0x8] sm:$0xff] %vm425_vm1, %v3396_v4 }
  0x18 PF: > { %v3503_v5 = vld [vmem:[%s3491_s26 + $0x8] sm:$0xff]  ;;  %v3506_v6 = vld [vmem:[%s3491_s26] sm:$0xff]  ;;  %s3397_s27 = smov 4   ;;  %v3398_v9 = vmov 8   ;;  %s3399_s28 = smov 124   ;;  %v3541_v24 = vld [vmem:[%s3491_s26 + $0x18] sm:$0xff] }
  0x19   : > { %463 = vrot.lane.b32.xlu1 %v3503_v5, %s3397_s27  ;;  %461 = vrot.lane.b32.xlu0 %v3506_v6, %s3397_s27  ;;  %v3517_v12 = vsub.f32 1.0, %v3503_v5  ;;  %v3520_v13 = vsub.f32 1.0, %v3506_v6  ;;  %v3544_v25 = vld [vmem:[%s3491_s26 + $0x10] sm:$0xff]  ;;  %v3549_v26 = vld [vmem:[%s3491_s26 + $0x20] sm:$0xff]  ;;  %vm549_vm2 = vcmask 31744   ;;  %vm1225_vm3 = vcmask 1043456  }
  0x1a   : > { %3199 = vset.pattern.permute.xlu0 %v3398_v9  ;;  %3200 = vset.pattern.permute.xlu1 %v3398_v9  ;;  %v3553_v31 = vld [vmem:[%s3491_s26 + $0x28] sm:$0xff]  ;;  %v3557_v36 = vld [vmem:[%s3491_s26 + $0x30] sm:$0xff]  ;;  %v2537_v39 = vld [vmem:[%s4320_s1] ss:$0 sm:$0xff]  ;;  %vm918_vm4 = vcmask 64512   ;;  %vm2344_vm5 = vcmask 7168  }
  0x1b   : > { %v2538_v42 = vld [vmem:[%s4321_s2] ss:$0 sm:$0xff]  ;;  %v3570_v43 = vld [vmem:[%s3491_s26 + $0x38] sm:$0xff]  ;;  %p2589_p6 = scmp.ne.s32.totalorder %s3384_s17, 1 }
  0x1c   : > { %v2539_v52 = vld [vmem:[%s4328_s9] ss:$0 sm:$0xff] }
  0x1e   : > { %v439_v22 = vld [vmem:[#allocation3] sm:$0xff]  ;;  %v440_v23 = vld [vmem:[#allocation3 + $0x8] sm:$0xff]  ;;  %v441_v29 = vld [vmem:[#allocation4] sm:$0xff] }
  0x1f   : > { %v438_v7 = vld [vmem:[#allocation2 + $0x8] sm:$0xff]  ;;  %v437_v8 = vld [vmem:[#allocation2] sm:$0xff]  ;;  %v445_v27 = vsub.f32 1.0, %v439_v22  ;;  %v446_v28 = vsub.f32 1.0, %v440_v23 }
  0x20   : > { %475 = vrot.lane.b32.xlu1 %v438_v7, %s3397_s27  ;;  %473 = vrot.lane.b32.xlu0 %v437_v8, %s3397_s27  ;;  %v442_v30 = vld [vmem:[#allocation4 + $0x8] sm:$0xff] }
  0x21   : > { %v447_v32 = vmul.f32 %v445_v27, %v441_v29  ;;  %v448_v33 = vmul.f32 %v446_v28, %v442_v30  ;;  %v3634_v29 = vsub.f32 1.0, %v3553_v31 }
  0x24   : > { %451 = vperm.xlu0 %3199, %v3506_v6   ;;  %456 = vperm.xlu1 %3200, %v3503_v5  }
  0x8b   : > { %v464_v10 = vpop.permute.xlu1 %463  ;;  %v462_v11 = vpop.permute.xlu0 %461 }
  0x8c   : > { %v3523_v16 = vmul.f32 %v464_v10, %v3503_v5  ;;  %v3526_v17 = vmul.f32 %v462_v11, %v3506_v6 }
  0x92   : > { %v476_v14 = vpop.permute.xlu1 %475  ;;  %v474_v15 = vpop.permute.xlu0 %473 }
  0x93   : > { %v480_v18 = vmul.f32 %v476_v14, %v3517_v12  ;;  %v479_v19 = vmul.f32 %v474_v15, %v3520_v13  ;;  %v3620_v14 = vsub.f32 1.0, %v3549_v26  ;;  %v3623_v15 = vsub.f32 1.0, %v3541_v24 }
  0x95   : > { %v3531_v20 = vadd.f32 %v480_v18, %v3523_v16  ;;  %v3534_v21 = vadd.f32 %v479_v19, %v3526_v17 }
  0x97   : > { %511 = vrot.lane.b32.xlu0 %v3531_v20, %s3399_s28  ;;  %509 = vrot.lane.b32.xlu1 %v3534_v21, %s3399_s28 }
  0x9b   : > { %582 = vperm.xlu0 %3199, %v3541_v24   ;;  %577 = vperm.xlu1 %3200, %v3544_v25  }
  0x9f   : > { %669 = vperm.xlu1 %3200, %v3549_v26  }
  0xa3   : > { %674 = vperm.xlu1 %3200, %v3553_v31   ;;  %v452_v34 = vpop.permute.xlu0 %451  ;;  %v457_v35 = vpop.permute.xlu1 %456 }
  0xa4   : > { %v459_v37 = vadd.f32 %v452_v34, %v447_v32  ;;  %v460_v38 = vadd.f32 %v457_v35, %v448_v33 }
  0xa6   : > { %560 = vst.msk [vmem:[#allocation11] sm:$0xff] %vm549_vm2, %v459_v37  ;;  %567 = vrot.lane.b32.xlu0 %v459_v37, %s3397_s27  ;;  %561 = vst.msk [vmem:[#allocation11 + $0x8] sm:$0xff] %vm549_vm2, %v460_v38  ;;  %v489_v40 = vmul.f32 %v2537_v39, %v459_v37  ;;  %v490_v41 = vmul.f32 %v2537_v39, %v460_v38 }
  0xa7   : > { %752 = vperm.xlu1 %3200, %v3557_v36  }
  0xa8   : > { %v497_v44 = vadd.f32 %v2538_v42, %v489_v40  ;;  %v498_v45 = vadd.f32 %v2538_v42, %v490_v41 }
  0xaa   : > { %569 = vrot.lane.b32.xlu0 %v460_v38, %s3397_s27  ;;  %v499_v46 = vmax.f32 %v497_v44, 0.0  ;;  %v500_v47 = vmax.f32 %v498_v45, 0.0 }
  0xab   : > { %757 = vperm.xlu1 %3200, %v3570_v43  }
  0xac   : > { %v501_v48 = vsub.f32 0.0, %v499_v46  ;;  %v502_v49 = vsub.f32 0.0, %v500_v47 }
  0xae   : > { %601 = vrot.lane.b32.xlu0 %v2537_v39, %s3397_s27  ;;  %v503_v50 = vmul.f32 1.442695, %v501_v48  ;;  %v505_v51 = vmul.f32 1.442695, %v502_v49 }
  0xaf   : > { %587 = vrot.lane.b32.xlu1 %v3544_v25, %s3397_s27 }
  0xb0   : > { %3203 = vpow2.f32 %v503_v50 }
  0xb1   : > { %3205 = vpow2.f32 %v505_v51 }
  0xb2   : > { %606 = vrot.lane.b32.xlu0 %v2538_v42, %s3397_s27 }
  0xb3   : > { %679 = vrot.lane.b32.xlu1 %v3549_v26, %s3397_s27 }
  0xb6   : > { %589 = vrot.lane.b32.xlu0 %v3541_v24, %s3397_s27 }
  0xb7   : > { %681 = vrot.lane.b32.xlu1 %v3553_v31, %s3397_s27 }
  0xba   : > { %v3204_v53 = vpop.eup %3203  ;;  %623 = vrot.lane.b32.xlu0 %v2539_v52, %s3397_s27 }
  0xbb   : > { %v3206_v54 = vpop.eup %3205  ;;  %v517_v55 = vsub.f32 1.0, %v3204_v53 }
  0xbc   : > { %v518_v56 = vsub.f32 1.0, %v3206_v54 }
  0xbd   : > { %v525_v57 = vmul.f32 %v2539_v52, %v517_v55 }
  0xbe   : > { %v526_v58 = vmul.f32 %v2539_v52, %v518_v56  ;;  %552 = vrot.lane.b32.xlu0 %v3506_v6, %s3399_s28  ;;  %v3610_v6 = vsub.f32 1.0, %v3544_v25 }
 0x109   : > { %v510_v59 = vpop.permute.xlu1 %509  ;;  %v512_v60 = vpop.permute.xlu0 %511 }
 0x10a   : > { %v515_v61 = vmul.f32 %v3204_v53, %v510_v59  ;;  %v516_v62 = vmul.f32 %v3206_v54, %v512_v60 }
 0x10c   : > { %v527_v63 = vadd.f32 %v525_v57, %v515_v61  ;;  %v528_v0 = vadd.f32 %v526_v58, %v516_v62 }
 0x10e   : > { %533 = vrot.lane.b32.xlu0 %v528_v0, %s3397_s27  ;;  %531 = vrot.lane.b32.xlu1 %v527_v63, %s3397_s27 }
 0x112   : > { %554 = vrot.lane.b32.xlu0 %v3503_v5, %s3399_s28  ;;  %762 = vrot.lane.b32.xlu1 %v3557_v36, %s3397_s27 }
 0x116   : > { %644 = vrot.lane.b32.xlu0 %v3544_v25, %s3399_s28  ;;  %764 = vrot.lane.b32.xlu1 %v3570_v43, %s3397_s27 }
 0x11a   : > { %v578_v1 = vpop.permute.xlu1 %577  ;;  %v583_v2 = vpop.permute.xlu0 %582  ;;  %646 = vrot.lane.b32.xlu1 %v3541_v24, %s3399_s28  ;;  %727 = vrot.lane.b32.xlu0 %v3549_v26, %s3399_s28 }
 0x11e   : > { %v670_v3 = vpop.permute.xlu1 %669  ;;  %v568_v4 = vpop.permute.xlu0 %567  ;;  %729 = vrot.lane.b32.xlu1 %v3553_v31, %s3399_s28  ;;  %810 = vrot.lane.b32.xlu0 %v3557_v36, %s3399_s28 }
 0x11f   : > { %v573_v5 = vmul.f32 %v568_v4, %v3520_v13 }
 0x121   : > { %v3612_v7 = vadd.f32 %v578_v1, %v573_v5 }
 0x122   : > { %v675_v8 = vpop.permute.xlu1 %674  ;;  %v570_v9 = vpop.permute.xlu0 %569  ;;  %812 = vrot.lane.b32.xlu1 %v3570_v43, %s3399_s28 }
 0x123   : > { %v665_v10 = vmul.f32 %v3610_v6, %v3612_v7  ;;  %v574_v11 = vmul.f32 %v570_v9, %v3517_v12 }
 0x125   : > { %v3625_v18 = vadd.f32 %v583_v2, %v574_v11  ;;  %v3627_v19 = vadd.f32 %v670_v3, %v665_v10 }
 0x126   : > { %v753_v22 = vpop.permute.xlu1 %752  ;;  %v602_v23 = vpop.permute.xlu0 %601 }
 0x127   : > { %v666_v27 = vmul.f32 %v3623_v15, %v3625_v18  ;;  %v748_v28 = vmul.f32 %v3620_v14, %v3627_v19  ;;  %v604_v32 = vmul.f32 %v602_v23, %v3612_v7  ;;  %v605_v34 = vmul.f32 %v602_v23, %v3625_v18 }
 0x128   : > { %v693_v35 = vmul.f32 %v3627_v19, %v602_v23 }
 0x129   : > { %v3636_v30 = vadd.f32 %v753_v22, %v748_v28  ;;  %v3639_v33 = vadd.f32 %v675_v8, %v666_v27  ;;  %v597_v22 = vmul.f32 %v3610_v6, %v3534_v21  ;;  %v598_v28 = vmul.f32 %v3623_v15, %v3531_v20 }
 0x12a   : > { %v758_v37 = vpop.permute.xlu1 %757  ;;  %v607_v38 = vpop.permute.xlu0 %606 }
 0x12b   : > { %v776_v39 = vmul.f32 %v3636_v30, %v602_v23  ;;  %v694_v40 = vmul.f32 %v3639_v33, %v602_v23  ;;  %v749_v41 = vmul.f32 %v3634_v29, %v3639_v33  ;;  %v609_v42 = vadd.f32 %v607_v38, %v604_v32 }
 0x12c   : > { %v610_v44 = vadd.f32 %v607_v38, %v605_v34  ;;  %v695_v45 = vadd.f32 %v693_v35, %v607_v38 }
 0x12d   : > { %v3647_v46 = vadd.f32 %v758_v37, %v749_v41  ;;  %v611_v47 = vmax.f32 %v609_v42, 0.0  ;;  %v696_v48 = vadd.f32 %v694_v40, %v607_v38  ;;  %v778_v49 = vadd.f32 %v776_v39, %v607_v38 }
 0x12e   : > { %v612_v50 = vmax.f32 %v610_v44, 0.0  ;;  %v697_v51 = vmax.f32 %v695_v45, 0.0  ;;  %v588_v52 = vpop.permute.xlu1 %587  ;;  %v590_v53 = vpop.permute.xlu0 %589 }
 0x12f   : > { %v777_v54 = vmul.f32 %v3647_v46, %v602_v23  ;;  %v613_v55 = vsub.f32 0.0, %v611_v47  ;;  %v698_v56 = vmax.f32 %v696_v48, 0.0  ;;  %v780_v57 = vmax.f32 %v778_v49, 0.0 }
 0x130   : > { %v614_v58 = vsub.f32 0.0, %v612_v50  ;;  %v699_v59 = vsub.f32 0.0, %v697_v51  ;;  %v593_v9 = vmul.f32 %v3544_v25, %v588_v52  ;;  %v594_v11 = vmul.f32 %v3541_v24, %v590_v53 }
 0x131   : > { %v615_v60 = vmul.f32 1.442695, %v613_v55  ;;  %v700_v61 = vsub.f32 0.0, %v698_v56  ;;  %v779_v62 = vadd.f32 %v777_v54, %v607_v38  ;;  %v782_v63 = vsub.f32 0.0, %v780_v57 }
 0x132   : > { %v617_v0 = vmul.f32 1.442695, %v614_v58  ;;  %v701_v1 = vmul.f32 1.442695, %v699_v59  ;;  %v680_v2 = vpop.permute.xlu1 %679  ;;  %v624_v3 = vpop.permute.xlu0 %623  ;;  %v599_v32 = vadd.f32 %v597_v22, %v593_v9  ;;  %v600_v25 = vadd.f32 %v598_v28, %v594_v11 }
 0x133   : > { %3207 = vpow2.f32 %v615_v60  ;;  %v703_v4 = vmul.f32 1.442695, %v700_v61  ;;  %v781_v5 = vmax.f32 %v779_v62, 0.0  ;;  %v784_v8 = vmul.f32 1.442695, %v782_v63 }
 0x134   : > { %3209 = vpow2.f32 %v617_v0  ;;  %v685_v24 = vmul.f32 %v3549_v26, %v680_v2  ;;  %v689_v37 = vmul.f32 %v3620_v14, %v599_v32  ;;  %v690_v38 = vmul.f32 %v3634_v29, %v600_v25 }
 0x135   : > { %3211 = vpow2.f32 %v701_v1  ;;  %v783_v10 = vsub.f32 0.0, %v781_v5  ;;  %v3400_v28 = vmov 0.0  }
 0x136   : > { %3213 = vpow2.f32 %v703_v4  ;;  %v553_v23 = vpop.permute.xlu0 %552  ;;  %v682_v34 = vpop.permute.xlu1 %681  ;;  %v691_v47 = vadd.f32 %v689_v37, %v685_v24  ;;  %1007 = vmatprep.mubr.f32.mxu0 %v3400_v28 }
 0x137   : > { %3215 = vpow2.f32 %v784_v8  ;;  %v786_v27 = vmul.f32 1.442695, %v783_v10  ;;  %558 = vst.msk [vmem:[#allocation10] sm:$0xff] %vm549_vm2, %v553_v23  ;;  %v3658_v35 = vmul.f32 %v3553_v31, %v682_v34 }
 0x139   : > { %3217 = vpow2.f32 %v786_v27  ;;  %v3664_v42 = vadd.f32 %v690_v38, %v3658_v35  ;;  %v770_v27 = vsub.f32 1.0, %v3557_v36 }
 0x13d   : > { %v3208_v21 = vpop.eup %3207 }
 0x13e   : > { %v3210_v39 = vpop.eup %3209  ;;  %v850_v40 = vld [vmem:[#allocation10] sm:$0xff]  ;;  %v621_v41 = vsub.f32 1.0, %v3208_v21  ;;  %v619_v31 = vmul.f32 %v3208_v21, %v599_v32  ;;  %v771_v21 = vsub.f32 1.0, %v3570_v43 }
 0x13f   : > { %v3212_v20 = vpop.eup %3211  ;;  %866 = vrot.lane.b32.xlu1 %v850_v40, %s3397_s27  ;;  %v622_v44 = vsub.f32 1.0, %v3210_v39  ;;  %v620_v50 = vmul.f32 %v3210_v39, %v600_v25 }
 0x140   : > { %v3214_v45 = vpop.eup %3213  ;;  %v626_v48 = vmul.f32 %v624_v3, %v621_v41  ;;  %v707_v26 = vsub.f32 1.0, %v3212_v20  ;;  %v705_v54 = vmul.f32 %v3212_v20, %v691_v47  ;;  %v773_v40 = vmul.f32 %v771_v21, %v3664_v42 }
 0x141   : > { %v3216_v49 = vpop.eup %3215  ;;  %v706_v51 = vmul.f32 %v3214_v45, %v3664_v42  ;;  %v627_v52 = vmul.f32 %v624_v3, %v622_v44  ;;  %v708_v53 = vsub.f32 1.0, %v3214_v45 }
 0x142   : > { %v628_v55 = vadd.f32 %v626_v48, %v619_v31  ;;  %v709_v56 = vmul.f32 %v707_v26, %v624_v3  ;;  %v790_v57 = vsub.f32 1.0, %v3216_v49 }
 0x143   : > { %v3218_v58 = vpop.eup %3217  ;;  %v629_v59 = vadd.f32 %v627_v52, %v620_v50  ;;  %v710_v60 = vmul.f32 %v708_v53, %v624_v3 }
 0x144   : > { %v630_v61 = vmul.f32 %v628_v55, %v3610_v6  ;;  %v711_v62 = vadd.f32 %v709_v56, %v705_v54  ;;  %v792_v63 = vmul.f32 %v790_v57, %v624_v3  ;;  %v791_v0 = vsub.f32 1.0, %v3218_v58  ;;  %v899_v6 = vld [vmem:[%s4322_s3 + $0x8] sm:$0xff] }
 0x145   : > { %v631_v1 = vmul.f32 %v629_v59, %v3623_v15  ;;  %v712_v2 = vadd.f32 %v710_v60, %v706_v51  ;;  %943 = vmatprep.subr.mxu0 %v899_v6  ;;  %v1375_v59 = vld [vmem:[%s4326_s7 + $0x8] sm:$0xff]  ;;  %v1377_v60 = vld [vmem:[%s4326_s7 + $0x18] sm:$0xff] }
 0x146   : > { %v632_v4 = vadd.f32 %v630_v61, %v593_v9  ;;  %v713_v5 = vmul.f32 %v711_v62, %v3620_v14  ;;  %v793_v8 = vmul.f32 %v791_v0, %v624_v3  ;;  %v898_v14 = vld [vmem:[%s4322_s3] sm:$0xff]  ;;  %v900_v3 = vld [vmem:[%s4322_s3 + $0x10] sm:$0xff]  ;;  %v3743_v61 = vpack.c.bf16 %v1377_v60, %v1375_v59 }
 0x147   : > { %v633_v10 = vadd.f32 %v631_v1, %v594_v11  ;;  %944 = vmatpush1.msra.mxu0 %v898_v14  ;;  %2685 = vmatprep.subr.mxu1 %v900_v3  ;;  %v714_v25 = vmul.f32 %v712_v2, %v3634_v29  ;;  %v1376_v0 = vld [vmem:[%s4326_s7 + $0x10] sm:$0xff]  ;;  %v1379_v1 = vld [vmem:[%s4326_s7 + $0x28] sm:$0xff]  ;;  %v1381_v2 = vld [vmem:[%s4326_s7 + $0x38] sm:$0xff] }
 0x148   : > { %636 = vrot.lane.b32.xlu0 %v632_v4, %s3399_s28  ;;  %v715_v22 = vadd.f32 %v713_v5, %v685_v24  ;;  %2686 = vmatpush3.msra.mxu1 %v900_v3  ;;  %v1380_v14 = vld [vmem:[%s4326_s7 + $0x30] sm:$0xff]  ;;  %v1383_v3 = vld [vmem:[%s4326_s7 + $0x48] sm:$0xff] }
 0x149   : > { %638 = vrot.lane.b32.xlu1 %v633_v10, %s3399_s28  ;;  %v716_v29 = vadd.f32 %v714_v25, %v3658_v35  ;;  %2854 = vmatprep.subr.bf16.mxu0 %v3743_v61 }
 0x14c   : > { %719 = vrot.lane.b32.xlu0 %v715_v22, %s3399_s28 }
 0x180   : > { %v534_v23 = vpop.permute.xlu0 %533  ;;  %v532_v15 = vpop.permute.xlu1 %531 }
 0x181   : > { %v538_v9 = vmul.f32 %v534_v23, %v3517_v12  ;;  %v537_v11 = vmul.f32 %v532_v15, %v3520_v13  ;;  %v772_v12 = vmul.f32 %v770_v27, %v691_v47  ;;  %v3772_v23 = vpack.c.bf16 %v1381_v2, %v1379_v1  ;;  %v1378_v15 = vld [vmem:[%s4326_s7 + $0x20] sm:$0xff] }
 0x182   : > { %v1390_v2 = vld [vmem:[%s4326_s7 + $0x80] sm:$0xff] }
 0x183   : > { %v540_v32 = vadd.f32 %v538_v9, %v3523_v16  ;;  %v539_v34 = vadd.f32 %v537_v11, %v3526_v17  ;;  %v3698_v16 = vld [vmem:[%s4324_s5] sm:$0xf]  ;;  %v1385_v9 = vld [vmem:[%s4326_s7 + $0x58] sm:$0xff] }
 0x184   : > { %v555_v24 = vpop.permute.xlu0 %554  ;;  %v763_v37 = vpop.permute.xlu1 %762  ;;  %2699 = vmatprep.subr.msk.mxu1 %vm1225_vm3, %v3698_v16 }
 0x185   : > { %559 = vst.msk [vmem:[#allocation10 + $0x8] sm:$0xff] %vm549_vm2, %v555_v24  ;;  %v768_v13 = vmul.f32 %v3557_v36, %v763_v37  ;;  %545 = vrot.lane.b32.xlu1 %v540_v32, %s3399_s28  ;;  %543 = vrot.lane.b32.xlu0 %v539_v34, %s3399_s28  ;;  %v3793_v34 = vpack.c.bf16 %v1380_v14, %v1378_v15  ;;  %v1382_v37 = vld [vmem:[%s4326_s7 + $0x40] sm:$0xff]  ;;  %v1396_v14 = vld [vmem:[%s4326_s7 + $0xb0] sm:$0xff] }
 0x186   : > { %v3798_v24 = vpack.c.bf16 %v1385_v9, %v1383_v3  ;;  %v1394_v15 = vld [vmem:[%s4326_s7 + $0xa0] sm:$0xff]  ;;  %v1399_v9 = vld [vmem:[%s4326_s7 + $0xc8] sm:$0xff] }
 0x187   : > { %v3702_v17 = vadd.f32 %v772_v12, %v768_v13  ;;  %v1384_v12 = vld [vmem:[%s4326_s7 + $0x50] sm:$0xff]  ;;  %v3903_v3 = vpack.c.bf16 %v1396_v14, %v1394_v15  ;;  %v1410_v15 = vld [vmem:[%s4327_s8 + $0x20] sm:$0xff]  ;;  %v1411_v14 = vld [vmem:[%s4327_s8 + $0x28] sm:$0xff] }
 0x188   : > { %v645_v36 = vpop.permute.xlu0 %644  ;;  %v765_v38 = vpop.permute.xlu1 %764 }
 0x189   : > { %v788_v39 = vmul.f32 %v3216_v49, %v3702_v17  ;;  %650 = vst.msk [vmem:[#allocation10 + $0x10] sm:$0xff] %vm549_vm2, %v645_v36  ;;  %v769_v41 = vmul.f32 %v3570_v43, %v765_v38  ;;  %721 = vrot.lane.b32.xlu0 %v716_v29, %s3399_s28  ;;  %v3810_v29 = vpack.c.bf16 %v1384_v12, %v1382_v37  ;;  %v1403_v12 = vld [vmem:[%s4326_s7 + $0xe8] sm:$0xff] }
 0x18b   : > { %v794_v20 = vadd.f32 %v792_v63, %v788_v39  ;;  %v3710_v44 = vadd.f32 %v773_v40, %v769_v41 }
 0x18c   : > { %v647_v45 = vpop.permute.xlu1 %646  ;;  %v851_v31 = vld [vmem:[#allocation10 + $0x8] sm:$0xff]  ;;  %v728_v47 = vpop.permute.xlu0 %727 }
 0x18d   : > { %v796_v48 = vmul.f32 %v794_v20, %v770_v27  ;;  %v789_v35 = vmul.f32 %v3218_v58, %v3710_v44  ;;  %651 = vst.msk [vmem:[#allocation10 + $0x18] sm:$0xff] %vm549_vm2, %v647_v45  ;;  %868 = vrot.lane.b32.xlu1 %v851_v31, %s3397_s27  ;;  %733 = vst.msk [vmem:[#allocation10 + $0x20] sm:$0xff] %vm549_vm2, %v728_v47 }
 0x18f   : > { %v798_v42 = vadd.f32 %v796_v48, %v768_v13  ;;  %v795_v26 = vadd.f32 %v793_v8, %v789_v35 }
 0x190   : > { %v730_v43 = vpop.permute.xlu1 %729  ;;  %v852_v49 = vld [vmem:[#allocation10 + $0x10] sm:$0xff]  ;;  %v811_v50 = vpop.permute.xlu0 %810 }
 0x191   : > { %v797_v51 = vmul.f32 %v795_v26, %v771_v21  ;;  %734 = vst.msk [vmem:[#allocation10 + $0x28] sm:$0xff] %vm549_vm2, %v730_v43  ;;  %870 = vrot.lane.b32.xlu1 %v852_v49, %s3397_s27  ;;  %802 = vrot.lane.b32.xlu0 %v798_v42, %s3399_s28  ;;  %816 = vst.msk [vmem:[#allocation10 + $0x30] sm:$0xff] %vm549_vm2, %v811_v50  ;;  %v1185_v43 = vld [vmem:[#allocation11] sm:$0xff] }
 0x192   : > { %838 = vst.msk [vmem:[#allocation3] sm:$0xff] %vm549_vm2, %v811_v50 }
 0x193   : > { %v799_v52 = vadd.f32 %v797_v51, %v769_v41  ;;  %v1186_v51 = vld [vmem:[#allocation11 + $0x8] sm:$0xff] }
 0x194   : > { %v813_v53 = vpop.permute.xlu1 %812  ;;  %v853_v54 = vld [vmem:[#allocation10 + $0x18] sm:$0xff]  ;;  %v854_v55 = vld [vmem:[#allocation10 + $0x20] sm:$0xff] }
 0x195   : > { %817 = vst.msk [vmem:[#allocation10 + $0x38] sm:$0xff] %vm549_vm2, %v813_v53  ;;  %839 = vst.msk [vmem:[#allocation3 + $0x8] sm:$0xff] %vm549_vm2, %v813_v53  ;;  %804 = vrot.lane.b32.xlu0 %v799_v52, %s3399_s28  ;;  %872 = vrot.lane.b32.xlu1 %v853_v54, %s3397_s27 }
 0x198   : > { %v855_v56 = vld [vmem:[#allocation10 + $0x28] sm:$0xff]  ;;  %v856_v57 = vld [vmem:[#allocation10 + $0x30] sm:$0xff] }
 0x199   : > { %874 = vrot.lane.b32.xlu0 %v854_v55, %s3397_s27  ;;  %876 = vrot.lane.b32.xlu1 %v855_v56, %s3397_s27 }
 0x19c   : > { %v857_v58 = vld [vmem:[#allocation10 + $0x38] sm:$0xff] }
 0x19d   : > { %878 = vrot.lane.b32.xlu0 %v856_v57, %s3397_s27  ;;  %880 = vrot.lane.b32.xlu1 %v857_v58, %s3397_s27 }
 0x1a1   : > { %654 = vrot.lane.b32.xlu0 %v3612_v7, %s3399_s28  ;;  %656 = vrot.lane.b32.xlu1 %v3625_v18, %s3399_s28 }
 0x1a5   : > { %737 = vrot.lane.b32.xlu0 %v3627_v19, %s3399_s28  ;;  %739 = vrot.lane.b32.xlu1 %v3639_v33, %s3399_s28 }
 0x1a9   : > { %820 = vrot.lane.b32.xlu0 %v3636_v30, %s3399_s28  ;;  %822 = vrot.lane.b32.xlu1 %v3647_v46, %s3399_s28  ;;  %v1374_v46 = vld [vmem:[%s4326_s7] sm:$0xff] }
 0x1aa   : > { %v3768_v10 = vpack.c.bf16 %v1376_v0, %v1374_v46  ;;  %v1391_v46 = vld [vmem:[%s4326_s7 + $0x88] sm:$0xff]  ;;  %v1393_v0 = vld [vmem:[%s4326_s7 + $0x98] sm:$0xff] }
 0x1ab   : > { %v3877_v1 = vpack.c.bf16 %v1393_v0, %v1391_v46  ;;  %v1406_v46 = vld [vmem:[%s4327_s8] sm:$0xff]  ;;  %v1407_v0 = vld [vmem:[%s4327_s8 + $0x8] sm:$0xff] }
 0x1b1   : > { %v867_v7 = vpop.permute.xlu1 %866 }
 0x1ba   : > { %v637_v18 = vpop.permute.xlu0 %636 }
 0x1bb   : > { %642 = vst.msk [vmem:[#allocation9 + $0x10] sm:$0xff] %vm549_vm2, %v637_v18  ;;  %v639_v19 = vpop.permute.xlu1 %638  ;;  %v1387_v18 = vld [vmem:[%s4326_s7 + $0x68] sm:$0xff] }
 0x1bc   : > { %643 = vst.msk [vmem:[#allocation9 + $0x18] sm:$0xff] %vm549_vm2, %v639_v19  ;;  %v1389_v19 = vld [vmem:[%s4326_s7 + $0x78] sm:$0xff] }
 0x1be   : > { %v720_v33 = vpop.permute.xlu0 %719 }
 0x1bf   : > { %725 = vst.msk [vmem:[#allocation9 + $0x20] sm:$0xff] %vm549_vm2, %v720_v33  ;;  %v3859_v33 = vpack.c.bf16 %v1389_v19, %v1387_v18 }
 0x1c2   : > { %v844_v27 = vld [vmem:[#allocation9 + $0x10] sm:$0xff] }
 0x1c3   : > { %v845_v21 = vld [vmem:[#allocation9 + $0x18] sm:$0xff] }
 0x1c6   : > { %v846_v38 = vld [vmem:[#allocation9 + $0x20] sm:$0xff] }
 0x1f7   : > { %v544_v62 = vpop.permute.xlu0 %543  ;;  %v546_v63 = vpop.permute.xlu1 %545 }
 0x1f8   : > { %550 = vst.msk [vmem:[#allocation9] sm:$0xff] %vm549_vm2, %v544_v62  ;;  %551 = vst.msk [vmem:[#allocation9 + $0x8] sm:$0xff] %vm549_vm2, %v546_v63  ;;  %v1386_v62 = vld [vmem:[%s4326_s7 + $0x60] sm:$0xff]  ;;  %v1388_v63 = vld [vmem:[%s4326_s7 + $0x70] sm:$0xff] }
 0x1fb   : > { %v722_v30 = vpop.permute.xlu0 %721 }
 0x1fc   : > { %726 = vst.msk [vmem:[#allocation9 + $0x28] sm:$0xff] %vm549_vm2, %v722_v30  ;;  %v3867_v30 = vpack.c.bf16 %v1388_v63, %v1386_v62  ;;  %v1423_v62 = vld [vmem:[#allocation5 + $0x8] sm:$0xff] }
 0x1ff   : > { %v843_v4 = vld [vmem:[#allocation9 + $0x8] sm:$0xff]  ;;  %v869_v5 = vpop.permute.xlu1 %868  ;;  %v842_v8 = vld [vmem:[#allocation9] sm:$0xff] }
 0x200   : > { %v891_v22 = vsel %vm549_vm2, %v843_v4, %v869_v5  ;;  %v890_v6 = vsel %vm549_vm2, %v842_v8, %v867_v7  ;;  %v1392_v4 = vld [vmem:[%s4326_s7 + $0x90] sm:$0xff]  ;;  %v1395_v8 = vld [vmem:[%s4326_s7 + $0xa8] sm:$0xff] }
 0x201   : > { %2546 = vmatmul.mubr.msk.f32.vlgmr.msra.gmra.mrb[0].mxu0 %vm918_vm4, %v890_v6  ;;  %2687 = vmatprep.mubr.msk.f32.mxu1 %vm918_vm4, %v890_v6  ;;  %v3885_v5 = vpack.c.bf16 %v1392_v4, %v1390_v2  ;;  %v3989_v2 = vpack.c.bf16 %v1407_v0, %v1406_v46  ;;  %v1408_v4 = vld [vmem:[%s4327_s8 + $0x10] sm:$0xff] }
 0x202   : > { %2688 = vmatmul.mubr.msk.f32.vlgmr.msra.gmra.mrb[0].mxu1 %vm918_vm4, %v891_v22  ;;  %1013 = vmatprep.mubr.f32.mxu0 %v3400_v28 }
 0x203   : > { %v803_v11 = vpop.permute.xlu0 %802  ;;  %v871_v32 = vpop.permute.xlu1 %870  ;;  %2700 = vmatpush3.msk.msra.mxu1 %vm1225_vm3, %v3698_v16  ;;  %2856 = vmatpush1.bf16.msra.mxu0 %v3768_v10  ;;  %v847_v40 = vld [vmem:[#allocation9 + $0x28] sm:$0xff] }
 0x204   : > { %808 = vst.msk [vmem:[#allocation9 + $0x30] sm:$0xff] %vm549_vm2, %v803_v11  ;;  %v892_v25 = vsel %vm549_vm2, %v844_v27, %v871_v32  ;;  %2858 = vmatprep.subr.bf16.mxu0 %v3772_v23  ;;  %v1401_v11 = vld [vmem:[%s4326_s7 + $0xd8] sm:$0xff]  ;;  %v1398_v32 = vld [vmem:[%s4326_s7 + $0xc0] sm:$0xff]  ;;  %2886 = vmatprep.subr.bf16.mxu1 %v3989_v2 }
 0x205   : > { %2547 = vmatmul.mubr.msk.f32.gmra.mrb[2].mxu0 %vm918_vm4, %v891_v22  ;;  %2690 = vmatprep.mubr.msk.f32.mxu1 %vm918_vm4, %v892_v25  ;;  %v1397_v22 = vld [vmem:[%s4326_s7 + $0xb8] sm:$0xff]  ;;  %v3913_v27 = vpack.c.bf16 %v1401_v11, %v1399_v9  ;;  %v4009_v9 = vpack.c.bf16 %v1411_v14, %v1410_v15  ;;  %v1412_v11 = vld [vmem:[%s4327_s8 + $0x30] sm:$0xff] }
 0x206   : > { %1019 = vmatprep.mubr.f32.mxu0 %v3400_v28  ;;  %v3895_v6 = vpack.c.bf16 %v1397_v22, %v1395_v8  ;;  %v1409_v8 = vld [vmem:[%s4327_s8 + $0x18] sm:$0xff] }
 0x207   : > { %v805_v13 = vpop.permute.xlu0 %804  ;;  %v873_v16 = vpop.permute.xlu1 %872  ;;  %2860 = vmatpush1.bf16.msra.mxu0 %v3793_v34  ;;  %v3999_v22 = vpack.c.bf16 %v1409_v8, %v1408_v4 }
 0x208   : > { %809 = vst.msk [vmem:[#allocation9 + $0x38] sm:$0xff] %vm549_vm2, %v805_v13  ;;  %v893_v36 = vsel %vm549_vm2, %v845_v21, %v873_v16  ;;  %2862 = vmatprep.subr.bf16.mxu0 %v3798_v24  ;;  %v1405_v13 = vld [vmem:[%s4326_s7 + $0xf8] sm:$0xff]  ;;  %v1402_v16 = vld [vmem:[%s4326_s7 + $0xe0] sm:$0xff] }
 0x209   : > { %2548 = vmatmul.mubr.msk.f32.gmra.mrb[4].mxu0 %vm918_vm4, %v892_v25  ;;  %2691 = vmatmul.mubr.msk.f32.gmra.mrb[2].mxu1 %vm918_vm4, %v893_v36  ;;  %v1400_v25 = vld [vmem:[%s4326_s7 + $0xd0] sm:$0xff]  ;;  %v3931_v21 = vpack.c.bf16 %v1405_v13, %v1403_v12  ;;  %v1414_v12 = vld [vmem:[%s4327_s8 + $0x40] sm:$0xff]  ;;  %v1415_v13 = vld [vmem:[%s4327_s8 + $0x48] sm:$0xff] }
 0x20a   : > { %1025 = vmatprep.mubr.f32.mxu0 %v3400_v28  ;;  %v3921_v37 = vpack.c.bf16 %v1400_v25, %v1398_v32  ;;  %v1413_v32 = vld [vmem:[%s4327_s8 + $0x38] sm:$0xff] }
 0x20b   : > { %v875_v39 = vpop.permute.xlu0 %874  ;;  %v877_v41 = vpop.permute.xlu1 %876  ;;  %2864 = vmatpush1.bf16.msra.mxu0 %v3810_v29  ;;  %v848_v31 = vld [vmem:[#allocation9 + $0x30] sm:$0xff]  ;;  %v4019_v25 = vpack.c.bf16 %v1413_v32, %v1412_v11 }
 0x20c   : > { %v894_v20 = vsel %vm549_vm2, %v846_v38, %v875_v39  ;;  %v895_v45 = vsel %vm549_vm2, %v847_v40, %v877_v41  ;;  %2866 = vmatprep.subr.bf16.mxu0 %v3859_v33  ;;  %v2562_v39 = vld [vmem:[%s4325_s6] ss:$0 sm:$0xff] }
 0x20d   : > { %2549 = vmatmul.mubr.msk.f32.gmra.mrb[6].mxu0 %vm918_vm4, %v893_v36  ;;  %2693 = vmatprep.mubr.msk.f32.mxu1 %vm918_vm4, %v894_v20  ;;  %v1404_v36 = vld [vmem:[%s4326_s7 + $0xf0] sm:$0xff] }
 0x20e   : > { %2694 = vmatmul.mubr.msk.f32.gmra.mrb[4].mxu1 %vm918_vm4, %v895_v45  ;;  %1031 = vmatprep.mubr.f32.mxu0 %v3400_v28  ;;  %v3939_v38 = vpack.c.bf16 %v1404_v36, %v1402_v16  ;;  %v4029_v16 = vpack.c.bf16 %v1415_v13, %v1414_v12  ;;  %v1416_v36 = vld [vmem:[%s4327_s8 + $0x50] sm:$0xff] }
 0x20f   : > { %v879_v47 = vpop.permute.xlu0 %878  ;;  %v849_v48 = vld [vmem:[#allocation9 + $0x38] sm:$0xff]  ;;  %v881_v35 = vpop.permute.xlu1 %880  ;;  %2868 = vmatpush1.bf16.msra.mxu0 %v3867_v30 }
 0x210   : > { %v896_v42 = vsel %vm549_vm2, %v848_v31, %v879_v47  ;;  %v897_v26 = vsel %vm549_vm2, %v849_v48, %v881_v35  ;;  %2870 = vmatprep.subr.bf16.mxu0 %v3877_v1 }
 0x211   : > { %2550 = vmatmul.mubr.msk.f32.gmra.mrb[8].mxu0 %vm918_vm4, %v894_v20  ;;  %2696 = vmatprep.mubr.msk.f32.mxu1 %vm918_vm4, %v896_v42 }
 0x212   : > { %2697 = vmatmul.mubr.msk.f32.gmra.mrb[6].mxu1 %vm918_vm4, %v897_v26  ;;  %1037 = vmatprep.mubr.f32.mxu0 %v3400_v28 }
 0x213   : > { %v655_v49 = vpop.permute.xlu0 %654  ;;  %2701 = vmatprep.mubr.msk.f32.mxu1 %vm549_vm2, %v1185_v43  ;;  %v657_v50 = vpop.permute.xlu1 %656  ;;  %2872 = vmatpush1.bf16.msra.mxu0 %v3885_v5 }
 0x214   : > { %660 = vst.msk [vmem:[#allocation11 + $0x10] sm:$0xff] %vm549_vm2, %v655_v49  ;;  %661 = vst.msk [vmem:[#allocation11 + $0x18] sm:$0xff] %vm549_vm2, %v657_v50  ;;  %2874 = vmatprep.subr.bf16.mxu0 %v3895_v6 }
 0x215   : > { %2551 = vmatmul.mubr.msk.f32.gmra.mrb[10].mxu0 %vm918_vm4, %v895_v45 }
 0x216   : > { %2702 = vmatmul.mubr.msk.f32.vlgmr.msra.gmra.mrb[8].mxu1 %vm549_vm2, %v1186_v51  ;;  %1043 = vmatprep.mubr.f32.mxu0 %v3400_v28 }
 0x217   : > { %v738_v52 = vpop.permute.xlu0 %737  ;;  %v740_v53 = vpop.permute.xlu1 %739  ;;  %2876 = vmatpush1.bf16.msra.mxu0 %v3903_v3  ;;  %2888 = vmatpush3.bf16.msra.mxu1 %v3989_v2 }
 0x218   : > { %743 = vst.msk [vmem:[#allocation11 + $0x20] sm:$0xff] %vm549_vm2, %v738_v52  ;;  %744 = vst.msk [vmem:[#allocation11 + $0x28] sm:$0xff] %vm549_vm2, %v740_v53  ;;  %2878 = vmatprep.subr.bf16.mxu0 %v3913_v27  ;;  %2890 = vmatprep.subr.bf16.mxu1 %v3999_v22 }
 0x219   : > { %2552 = vmatmul.mubr.msk.f32.gmra.mrb[12].mxu0 %vm918_vm4, %v896_v42 }
 0x21a   : > { %1049 = vmatprep.mubr.f32.mxu0 %v3400_v28 }
 0x21b   : > { %v821_v54 = vpop.permute.xlu0 %820  ;;  %v823_v55 = vpop.permute.xlu1 %822  ;;  %v1187_v56 = vld [vmem:[#allocation11 + $0x10] sm:$0xff]  ;;  %v1188_v57 = vld [vmem:[#allocation11 + $0x18] sm:$0xff]  ;;  %2880 = vmatpush1.bf16.msra.mxu0 %v3921_v37  ;;  %2892 = vmatpush3.bf16.msra.mxu1 %v3999_v22 }
 0x21c   : > { %826 = vst.msk [vmem:[#allocation11 + $0x30] sm:$0xff] %vm549_vm2, %v821_v54  ;;  %840 = vst.msk [vmem:[#allocation4] sm:$0xff] %vm549_vm2, %v821_v54  ;;  %2704 = vmatprep.mubr.msk.f32.mxu1 %vm549_vm2, %v1187_v56  ;;  %2882 = vmatprep.subr.bf16.mxu0 %v3931_v21 }
 0x21d   : > { %827 = vst.msk [vmem:[#allocation11 + $0x38] sm:$0xff] %vm549_vm2, %v823_v55  ;;  %841 = vst.msk [vmem:[#allocation4 + $0x8] sm:$0xff] %vm549_vm2, %v823_v55  ;;  %2553 = vmatmul.mubr.msk.f32.gmra.mrb[14].mxu0 %vm918_vm4, %v897_v26  ;;  %2705 = vmatmul.mubr.msk.f32.gmra.mrb[10].mxu1 %vm549_vm2, %v1188_v57 }
 0x21e   : > { %1498 = vmatprep.mubr.f32.mxu0 %v3400_v28  ;;  %2894 = vmatprep.subr.bf16.mxu1 %v4009_v9 }
 0x21f   : > { %v1189_v58 = vld [vmem:[#allocation11 + $0x20] sm:$0xff]  ;;  %v1190_v59 = vld [vmem:[#allocation11 + $0x28] sm:$0xff]  ;;  %2884 = vmatpush1.bf16.msra.mxu0 %v3939_v38  ;;  %2896 = vmatpush3.bf16.msra.mxu1 %v4009_v9 }
 0x220   : > { %2707 = vmatprep.mubr.msk.f32.mxu1 %vm549_vm2, %v1189_v58  ;;  %2918 = vmatprep.subr.bf16.mxu0 %v3743_v61 }
 0x221   : > { %2708 = vmatmul.mubr.msk.f32.gmra.mrb[12].mxu1 %vm549_vm2, %v1190_v59  ;;  %2898 = vmatprep.subr.bf16.mxu1 %v4019_v25 }
 0x223   : > { %v1191_v60 = vld [vmem:[#allocation11 + $0x30] sm:$0xff]  ;;  %2900 = vmatpush3.bf16.msra.mxu1 %v4019_v25 }
 0x224   : > { %v1192_v7 = vld [vmem:[#allocation11 + $0x38] sm:$0xff]  ;;  %2710 = vmatprep.mubr.msk.f32.mxu1 %vm549_vm2, %v1191_v60  ;;  %v1422_v60 = vld [vmem:[#allocation5] sm:$0xff]  ;;  %2902 = vmatprep.subr.bf16.mxu1 %v4029_v16 }
 0x225   : > { %2711 = vmatmul.mubr.msk.f32.gmra.mrb[14].mxu1 %vm549_vm2, %v1192_v7 }
 0x227   : > { %2904 = vmatpush3.bf16.msra.mxu1 %v4029_v16 }
 0x2e9   : > { %v2703_v40 = vpop.f32.mrb[8].mxu1 }
 0x2ea   : > { %v1301_v41 = vadd.f32 %v2703_v40, %v2562_v39  ;;  %v1295_v20 = vpop.f32.mrb[9].mxu1  ;;  %v1418_v40 = vld [vmem:[%s4327_s8 + $0x60] sm:$0xff] }
 0x2eb   : > { %v1296_v45 = vadd.f32 %v2562_v39, %v1295_v20  ;;  %v1419_v20 = vld [vmem:[%s4327_s8 + $0x68] sm:$0xff] }
 0x2ec   : > { %v1335_v31 = vmax.f32 %v1301_v41, 0.0 }
 0x2ed   : > { %v1334_v47 = vmax.f32 %v1296_v45, 0.0  ;;  %v4047_v45 = vpack.c.bf16 %v1419_v20, %v1418_v40 }
 0x2ee   : > { %v1343_v48 = vsub.f32 0.0, %v1335_v31  ;;  %v1420_v31 = vld [vmem:[%s4327_s8 + $0x70] sm:$0xff] }
 0x2ef   : > { %v1342_v35 = vsub.f32 0.0, %v1334_v47  ;;  %v1421_v47 = vld [vmem:[%s4327_s8 + $0x78] sm:$0xff] }
 0x2f0   : > { %v2706_v42 = vpop.f32.mrb[10].mxu1  ;;  %v1352_v26 = vmul.f32 1.442695, %v1343_v48  ;;  %v4058_v48 = vpack.c.bf16 %v1421_v47, %v1420_v31 }
 0x2f1   : > { %v1350_v43 = vmul.f32 1.442695, %v1342_v35  ;;  %v3947_v49 = vadd.f32 %v2706_v42, %v2562_v39  ;;  %v1305_v50 = vpop.f32.mrb[11].mxu1  ;;  %v903_v35 = vlaneseq }
 0x2f2   : > { %v3949_v51 = vadd.f32 %v2562_v39, %v1305_v50 }
 0x2f3   : > { %3219 = vpow2.f32 %v1350_v43  ;;  %v904_v42 = vshrl.u32 %v903_v35, 7  ;;  %v901_v43 = vld [vmem:[%s4323_s4] sm:$0x7] }
 0x2f4   : > { %v2709_v52 = vpop.f32.mrb[12].mxu1  ;;  %3221 = vpow2.f32 %v1352_v26 }
 0x2f5   : > { %v3951_v53 = vadd.f32 %v2709_v52, %v2562_v39  ;;  %v1315_v54 = vpop.f32.mrb[13].mxu1  ;;  %v909_v26 = vsub.s32 1, %v904_v42  ;;  %v905_v12 = vsub.s32 0, %v904_v42 }
 0x2f6   : > { %v3953_v55 = vadd.f32 %v2562_v39, %v1315_v54 }
 0x2f7   : > { %v4067_v50 = vrot.slane %v901_v43, %v909_v26  ;;  %v4089_v13 = vrot.slane %v901_v43, %v905_v12  ;;  %v913_v26 = vsub.s32 2, %v904_v42  ;;  %v4103_v12 = vld [vmem:[%s4329_s10] ss:$0 sm:$0xff] }
 0x2f8   : > { %v2712_v56 = vpop.f32.mrb[14].mxu1 }
 0x2f9   : > { %v3955_v57 = vadd.f32 %v2712_v56, %v2562_v39  ;;  %v1325_v58 = vpop.f32.mrb[15].mxu1 }
 0x2fa   : > { %v3957_v59 = vadd.f32 %v2562_v39, %v1325_v58  ;;  %v1417_v39 = vld [vmem:[%s4327_s8 + $0x58] sm:$0xff] }
 0x2fb   : > { %v4042_v41 = vpack.c.bf16 %v1417_v39, %v1416_v36 }
 0x2fd   : > { %v3220_v7 = vpop.eup %3219  ;;  %2906 = vmatprep.subr.bf16.mxu1 %v4042_v41 }
 0x2fe   : > { %v3959_v18 = vmul.f32 %v3220_v7, %v1422_v60  ;;  %v3222_v19 = vpop.eup %3221  ;;  %2908 = vmatpush3.bf16.msra.mxu1 %v4042_v41 }
 0x2ff   : > { %v3964_v63 = vmul.f32 %v3222_v19, %v1423_v62  ;;  %2910 = vmatprep.subr.bf16.mxu1 %v4047_v45 }
 0x300   : > { %1499 = vmatmul.mubr.f32.vlgmr.msra.gmra.mrb[0].mxu0 %v3959_v18 }
 0x301   : > { %1504 = vmatprep.mubr.f32.mxu0 %v3400_v28  ;;  %2920 = vmatpush1.bf16.msra.mxu0 %v3768_v10 }
 0x302   : > { %2922 = vmatprep.subr.bf16.mxu0 %v3772_v23  ;;  %2912 = vmatpush3.bf16.msra.mxu1 %v4047_v45 }
 0x303   : > { %2914 = vmatprep.subr.bf16.mxu1 %v4058_v48 }
 0x304   : > { %1505 = vmatmul.mubr.f32.gmra.mrb[2].mxu0 %v3964_v63 }
 0x305   : > { %2924 = vmatpush1.bf16.msra.mxu0 %v3793_v34  ;;  %1704 = vmatprep.mubr.f32.mxu0 %v3400_v28 }
 0x306   : > { %2926 = vmatprep.subr.bf16.mxu0 %v3798_v24  ;;  %2916 = vmatpush3.bf16.msra.mxu1 %v4058_v48 }
 0x307   : > { %2950 = vmatprep.subr.bf16.mxu1 %v3989_v2 }
 0x309   : > { %2928 = vmatpush1.bf16.msra.mxu0 %v3810_v29 }
 0x30a   : > { %2930 = vmatprep.subr.bf16.mxu0 %v3859_v33 }
 0x30d   : > { %2932 = vmatpush1.bf16.msra.mxu0 %v3867_v30 }
 0x30e   : > { %2934 = vmatprep.subr.bf16.mxu0 %v3877_v1 }
 0x311   : > { %2936 = vmatpush1.bf16.msra.mxu0 %v3885_v5 }
 0x312   : > { %2938 = vmatprep.subr.bf16.mxu0 %v3895_v6 }
 0x315   : > { %2940 = vmatpush1.bf16.msra.mxu0 %v3903_v3 }
 0x316   : > { %2942 = vmatprep.subr.bf16.mxu0 %v3913_v27 }
 0x319   : > { %2944 = vmatpush1.bf16.msra.mxu0 %v3921_v37 }
 0x31a   : > { %2946 = vmatprep.subr.bf16.mxu0 %v3931_v21 }
 0x31d   : > { %2948 = vmatpush1.bf16.msra.mxu0 %v3939_v38 }
 0x31e   : > { %2982 = vmatprep.subr.bf16.mxu0 %v3743_v61 }
 0x3d3   : > { %v1500_v52 = vpop.f32.mrb[0].mxu0 }
 0x3d4   : > { %v1502_v54 = vpop.f32.mrb[1].mxu0  ;;  %v3109_v39 = vadd.f32 %v1500_v52, %v4089_v13 }
 0x3d5   : > { %v3110_v56 = vadd.f32 %v1502_v54, %v4067_v50 }
 0x3d6   : > { %v2572_v20 = vmul.f32 -1.442695, %v3109_v39 }
 0x3d7   : > { %v2573_v58 = vmul.f32 -1.442695, %v3110_v56  ;;  %v1506_v60 = vpop.f32.mrb[2].mxu0  ;;  %v1336_v56 = vmax.f32 %v3949_v51, 0.0 }
 0x3d8   : > { %v1508_v7 = vpop.f32.mrb[3].mxu0  ;;  %v3111_v36 = vadd.f32 %v1506_v60, %v4089_v13 }
 0x3d9   : > { %3223 = vpow2.f32 %v2573_v58  ;;  %v3112_v19 = vadd.f32 %v1508_v7, %v4067_v50  ;;  %v4094_v58 = vrot.slane %v901_v43, %v913_v26  ;;  %v1337_v7 = vmax.f32 %v3947_v49, 0.0 }
 0x3da   : > { %v2574_v40 = vmul.f32 -1.442695, %v3111_v36  ;;  %v1344_v60 = vsub.f32 0.0, %v1336_v56 }
 0x3db   : > { %v2575_v62 = vmul.f32 -1.442695, %v3112_v19 }
 0x3dd   : > { %3225 = vpow2.f32 %v2575_v62 }
 0x3e3   : > { %v3224_v46 = vpop.eup %3223 }
 0x3e4   : > { %v1528_v0 = vadd.f32 1.0, %v3224_v46 }
 0x3e6   : > { %3227 = vrcp.f32 %v1528_v0  ;;  %v1345_v0 = vsub.f32 0.0, %v1337_v7 }
 0x3e7   : > { %v3226_v4 = vpop.eup %3225 }
 0x3e8   : > { %v1530_v8 = vadd.f32 1.0, %v3226_v4  ;;  %v1354_v4 = vmul.f32 1.442695, %v1344_v60  ;;  %v1356_v51 = vmul.f32 1.442695, %v1345_v0 }
 0x3ea   : > { %3229 = vrcp.f32 %v1530_v8 }
 0x3eb   : > { %3231 = vpow2.f32 %v2574_v40 }
 0x3ec   : > { %3233 = vpow2.f32 %v2572_v20 }
 0x3f0   : > { %v3228_v15 = vpop.eup %3227 }
 0x3f1   : > { %v1539_v14 = vmul.f32 %v3228_v15, %v3959_v18 }
 0x3f3   : > { %2745 = vmatprep.mubr.f32.mxu1 %v1539_v14 }
 0x3f4   : > { %v3230_v11 = vpop.eup %3229 }
 0x3f5   : > { %v1540_v32 = vmul.f32 %v3230_v11, %v3964_v63  ;;  %v3232_v31 = vpop.eup %3231 }
 0x3f6   : > { %v3234_v47 = vpop.eup %3233  ;;  %v1529_v35 = vadd.f32 1.0, %v3232_v31 }
 0x3f7   : > { %2746 = vmatmul.mubr.f32.vlgmr.msra.gmra.mrb[0].mxu1 %v1540_v32  ;;  %v1527_v54 = vadd.f32 1.0, %v3234_v47 }
 0x3f8   : > { %2952 = vmatpush3.bf16.msra.mxu1 %v3989_v2  ;;  %3235 = vrcp.f32 %v1529_v35 }
 0x3f9   : > { %2954 = vmatprep.subr.bf16.mxu1 %v3999_v22  ;;  %3237 = vrcp.f32 %v1527_v54 }
 0x3fc   : > { %2956 = vmatpush3.bf16.msra.mxu1 %v3999_v22 }
 0x3fd   : > { %2958 = vmatprep.subr.bf16.mxu1 %v4009_v9 }
 0x400   : > { %2960 = vmatpush3.bf16.msra.mxu1 %v4009_v9 }
 0x401   : > { %2962 = vmatprep.subr.bf16.mxu1 %v4019_v25 }
 0x402   : > { %v3236_v42 = vpop.eup %3235 }
 0x403   : > { %v3238_v8 = vpop.eup %3237  ;;  %v1621_v43 = vsub.f32 1.0, %v3236_v42 }
 0x404   : > { %2964 = vmatpush3.bf16.msra.mxu1 %v4019_v25  ;;  %v1620_v15 = vsub.f32 1.0, %v3238_v8 }
 0x405   : > { %2966 = vmatprep.subr.bf16.mxu1 %v4029_v16  ;;  %v1623_v11 = vmul.f32 %v1621_v43, %v3964_v63 }
 0x406   : > { %v1622_v36 = vmul.f32 %v1620_v15, %v3959_v18 }
 0x408   : > { %2968 = vmatpush3.bf16.msra.mxu1 %v4029_v16 }
 0x409   : > { %2970 = vmatprep.subr.bf16.mxu1 %v4042_v41 }
 0x40c   : > { %2972 = vmatpush3.bf16.msra.mxu1 %v4042_v41 }
 0x40d   : > { %2974 = vmatprep.subr.bf16.mxu1 %v4047_v45 }
 0x410   : > { %2976 = vmatpush3.bf16.msra.mxu1 %v4047_v45 }
 0x411   : > { %2978 = vmatprep.subr.bf16.mxu1 %v4058_v48 }
 0x414   : > { %2980 = vmatpush3.bf16.msra.mxu1 %v4058_v48 }
 0x415   : > { %3014 = vmatprep.subr.bf16.mxu1 %v3989_v2 }
 0x4ca   : > { %v2747_v19 = vpop.f32.mrb[0].mxu1 }
 0x4cb   : > { %v3125_v52 = vadd.f32 %v2747_v19, %v4094_v58  ;;  %v1607_v62 = vpop.f32.mrb[1].mxu1 }
 0x4cc   : > { %v3126_v46 = vadd.f32 %v1607_v62, %v4094_v58 }
 0x4cd   : > { %3239 = vtanh.f32 %v3125_v52 }
 0x4ce   : > { %3241 = vtanh.f32 %v3126_v46 }
 0x4cf   : > { %3243 = vpow2.f32 %v1354_v4 }
 0x4d0   : > { %3245 = vpow2.f32 %v1356_v51 }
 0x4d7   : > { %v3240_v14 = vpop.eup %3239 }
 0x4d8   : > { %v3242_v49 = vpop.eup %3241  ;;  %v1625_v32 = vmul.f32 %v3240_v14, %v3236_v42 }
 0x4d9   : > { %v1624_v39 = vmul.f32 %v3242_v49, %v3238_v8  ;;  %v3244_v31 = vpop.eup %3243 }
 0x4da   : > { %v4106_v40 = vadd.f32 %v1625_v32, %v1623_v11  ;;  %v3246_v18 = vpop.eup %3245 }
 0x4db   : > { %v4108_v20 = vadd.f32 %v1624_v39, %v1622_v36 }
 0x4dc   : > { %v2269_v47 = vmul.f32 %v4103_v12, %v4106_v40  ;;  %v4121_v26 = vmul.f32 %v3246_v18, %v4106_v40  ;;  %v1339_v18 = vmax.f32 %v3951_v53, 0.0 }
 0x4dd   : > { %v2268_v63 = vmul.f32 %v4103_v12, %v4108_v20  ;;  %v4115_v35 = vmul.f32 %v3244_v31, %v4108_v20 }
 0x4de   : > { %2278 = vadd.xlane.f32.xlu1 %v2269_v47 }
 0x4df   : > { %2276 = vadd.xlane.f32.xlu0 %v2268_v63  ;;  %1705 = vmatmul.mubr.f32.vlgmr.msra.gmra.mrb[4].mxu0 %v4115_v35  ;;  %v1338_v63 = vmax.f32 %v3953_v55, 0.0 }
 0x4e0   : > { %1710 = vmatprep.mubr.f32.mxu0 %v3400_v28  ;;  %2984 = vmatpush1.bf16.msra.mxu0 %v3768_v10 }
 0x4e1   : > { %2986 = vmatprep.subr.bf16.mxu0 %v3772_v23 }
 0x4e3   : > { %1711 = vmatmul.mubr.f32.gmra.mrb[6].mxu0 %v4121_v26 }
 0x4e4   : > { %2988 = vmatpush1.bf16.msra.mxu0 %v3793_v34  ;;  %1911 = vmatprep.mubr.f32.mxu0 %v3400_v28 }
 0x4e5   : > { %2990 = vmatprep.subr.bf16.mxu0 %v3798_v24 }
 0x4e8   : > { %2992 = vmatpush1.bf16.msra.mxu0 %v3810_v29 }
 0x4e9   : > { %2994 = vmatprep.subr.bf16.mxu0 %v3859_v33 }
 0x4ec   : > { %2996 = vmatpush1.bf16.msra.mxu0 %v3867_v30 }
 0x4ed   : > { %2998 = vmatprep.subr.bf16.mxu0 %v3877_v1 }
 0x4f0   : > { %3000 = vmatpush1.bf16.msra.mxu0 %v3885_v5 }
 0x4f1   : > { %3002 = vmatprep.subr.bf16.mxu0 %v3895_v6 }
 0x4f4   : > { %3004 = vmatpush1.bf16.msra.mxu0 %v3903_v3 }
 0x4f5   : > { %3006 = vmatprep.subr.bf16.mxu0 %v3913_v27 }
 0x4f8   : > { %3008 = vmatpush1.bf16.msra.mxu0 %v3921_v37 }
 0x4f9   : > { %3010 = vmatprep.subr.bf16.mxu0 %v3931_v21 }
 0x4fc   : > { %3012 = vmatpush1.bf16.msra.mxu0 %v3939_v38 }
 0x4fd   : > { %3046 = vmatprep.subr.bf16.mxu0 %v3743_v61 }
 0x5b2   : > { %v1706_v54 = vpop.f32.mrb[4].mxu0 }
 0x5b3   : > { %v1708_v56 = vpop.f32.mrb[5].mxu0  ;;  %v3113_v49 = vadd.f32 %v1706_v54, %v4089_v13 }
 0x5b4   : > { %v3114_v7 = vadd.f32 %v1708_v56, %v4067_v50  ;;  %v1346_v56 = vsub.f32 0.0, %v1338_v63 }
 0x5b5   : > { %v2576_v32 = vmul.f32 -1.442695, %v3113_v49 }
 0x5b6   : > { %v2577_v60 = vmul.f32 -1.442695, %v3114_v7  ;;  %v1712_v19 = vpop.f32.mrb[6].mxu0 }
 0x5b7   : > { %v1714_v52 = vpop.f32.mrb[7].mxu0  ;;  %v3115_v14 = vadd.f32 %v1712_v19, %v4089_v13 }
 0x5b8   : > { %3247 = vpow2.f32 %v2577_v60  ;;  %v3116_v62 = vadd.f32 %v1714_v52, %v4067_v50  ;;  %v1347_v52 = vsub.f32 0.0, %v1339_v18  ;;  %v1340_v18 = vmax.f32 %v3957_v59, 0.0 }
 0x5b9   : > { %v2578_v11 = vmul.f32 -1.442695, %v3115_v14 }
 0x5ba   : > { %v2579_v46 = vmul.f32 -1.442695, %v3116_v62  ;;  %v1358_v62 = vmul.f32 1.442695, %v1346_v56  ;;  %v1348_v56 = vsub.f32 0.0, %v1340_v18 }
 0x5bc   : > { %3249 = vpow2.f32 %v2579_v46 }
 0x5c2   : > { %v3248_v0 = vpop.eup %3247 }
 0x5c3   : > { %v1734_v4 = vadd.f32 1.0, %v3248_v0 }
 0x5c5   : > { %3251 = vrcp.f32 %v1734_v4  ;;  %v1360_v4 = vmul.f32 1.442695, %v1347_v52  ;;  %v1362_v52 = vmul.f32 1.442695, %v1348_v56 }
 0x5c6   : > { %v3250_v42 = vpop.eup %3249 }
 0x5c7   : > { %v1736_v8 = vadd.f32 1.0, %v3250_v42 }
 0x5c9   : > { %3253 = vrcp.f32 %v1736_v8 }
 0x5ca   : > { %3255 = vpow2.f32 %v2578_v11 }
 0x5cb   : > { %3257 = vpow2.f32 %v2576_v32 }
 0x5cf   : > { %v3252_v51 = vpop.eup %3251 }
 0x5d0   : > { %v1745_v61 = vmul.f32 %v3252_v51, %v4115_v35 }
 0x5d2   : > { %2780 = vmatprep.mubr.f32.mxu1 %v1745_v61 }
 0x5d3   : > { %v3254_v43 = vpop.eup %3253 }
 0x5d4   : > { %v1746_v15 = vmul.f32 %v3254_v43, %v4121_v26  ;;  %v3256_v36 = vpop.eup %3255 }
 0x5d5   : > { %v3258_v39 = vpop.eup %3257  ;;  %v1735_v31 = vadd.f32 1.0, %v3256_v36 }
 0x5d6   : > { %2781 = vmatmul.mubr.f32.vlgmr.msra.gmra.mrb[2].mxu1 %v1746_v15  ;;  %v1733_v47 = vadd.f32 1.0, %v3258_v39 }
 0x5d7   : > { %3016 = vmatpush3.bf16.msra.mxu1 %v3989_v2  ;;  %3259 = vrcp.f32 %v1735_v31 }
 0x5d8   : > { %3018 = vmatprep.subr.bf16.mxu1 %v3999_v22  ;;  %3261 = vrcp.f32 %v1733_v47 }
 0x5db   : > { %3020 = vmatpush3.bf16.msra.mxu1 %v3999_v22 }
 0x5dc   : > { %3022 = vmatprep.subr.bf16.mxu1 %v4009_v9 }
 0x5df   : > { %3024 = vmatpush3.bf16.msra.mxu1 %v4009_v9 }
 0x5e0   : > { %3026 = vmatprep.subr.bf16.mxu1 %v4019_v25 }
 0x5e1   : > { %v3260_v46 = vpop.eup %3259 }
 0x5e2   : > { %v3262_v0 = vpop.eup %3261  ;;  %v1827_v55 = vsub.f32 1.0, %v3260_v46 }
 0x5e3   : > { %3028 = vmatpush3.bf16.msra.mxu1 %v4019_v25  ;;  %v1826_v42 = vsub.f32 1.0, %v3262_v0 }
 0x5e4   : > { %3030 = vmatprep.subr.bf16.mxu1 %v4029_v16  ;;  %v1829_v51 = vmul.f32 %v1827_v55, %v4121_v26 }
 0x5e5   : > { %v1828_v43 = vmul.f32 %v1826_v42, %v4115_v35 }
 0x5e7   : > { %3032 = vmatpush3.bf16.msra.mxu1 %v4029_v16 }
 0x5e8   : > { %3034 = vmatprep.subr.bf16.mxu1 %v4042_v41 }
 0x5eb   : > { %3036 = vmatpush3.bf16.msra.mxu1 %v4042_v41 }
 0x5ec   : > { %3038 = vmatprep.subr.bf16.mxu1 %v4047_v45 }
 0x5ef   : > { %3040 = vmatpush3.bf16.msra.mxu1 %v4047_v45 }
 0x5f0   : > { %3042 = vmatprep.subr.bf16.mxu1 %v4058_v48 }
 0x5f3   : > { %3044 = vmatpush3.bf16.msra.mxu1 %v4058_v48 }
 0x5f4   : > { %3078 = vmatprep.subr.bf16.mxu1 %v3989_v2 }
 0x6a9   : > { %v2782_v7 = vpop.f32.mrb[2].mxu1 }
 0x6aa   : > { %v3127_v60 = vadd.f32 %v2782_v7, %v4094_v58  ;;  %v1813_v19 = vpop.f32.mrb[3].mxu1 }
 0x6ab   : > { %v3128_v54 = vadd.f32 %v1813_v19, %v4094_v58 }
 0x6ac   : > { %3263 = vtanh.f32 %v3127_v60 }
 0x6ad   : > { %3265 = vtanh.f32 %v3128_v54 }
 0x6ae   : > { %3267 = vpow2.f32 %v1358_v62 }
 0x6af   : > { %3269 = vpow2.f32 %v1360_v4 }
 0x6b6   : > { %v3264_v8 = vpop.eup %3263 }
 0x6b7   : > { %v3266_v53 = vpop.eup %3265  ;;  %v1831_v61 = vmul.f32 %v3264_v8, %v3260_v46 }
 0x6b8   : > { %v1830_v15 = vmul.f32 %v3266_v53, %v3262_v0  ;;  %v3268_v11 = vpop.eup %3267 }
 0x6b9   : > { %v4168_v14 = vadd.f32 %v1831_v61, %v1829_v51  ;;  %v3270_v39 = vpop.eup %3269 }
 0x6ba   : > { %v4170_v49 = vadd.f32 %v1830_v15, %v1828_v43 }
 0x6bb   : > { %v2271_v32 = vmul.f32 %v4103_v12, %v4168_v14  ;;  %v4183_v35 = vmul.f32 %v3270_v39, %v4168_v14 }
 0x6bc   : > { %v4175_v36 = vmul.f32 %v3268_v11, %v4170_v49  ;;  %v2270_v26 = vmul.f32 %v4103_v12, %v4170_v49 }
 0x6bd   : > { %2282 = vadd.xlane.f32.xlu0 %v2271_v32 }
 0x6be   : > { %1912 = vmatmul.mubr.f32.vlgmr.msra.gmra.mrb[8].mxu0 %v4175_v36 }
 0x6bf   : > { %1917 = vmatprep.mubr.f32.mxu0 %v3400_v28  ;;  %3048 = vmatpush1.bf16.msra.mxu0 %v3768_v10 }
 0x6c0   : > { %3050 = vmatprep.subr.bf16.mxu0 %v3772_v23 }
 0x6c1   : > { %2280 = vadd.xlane.f32.xlu0 %v2270_v26 }
 0x6c2   : > { %1918 = vmatmul.mubr.f32.gmra.mrb[10].mxu0 %v4183_v35 }
 0x6c3   : > { %3052 = vmatpush1.bf16.msra.mxu0 %v3793_v34  ;;  %2118 = vmatprep.mubr.f32.mxu0 %v3400_v28 }
 0x6c4   : > { %3054 = vmatprep.subr.bf16.mxu0 %v3798_v24 }
 0x6c7   : > { %3056 = vmatpush1.bf16.msra.mxu0 %v3810_v29 }
 0x6c8   : > { %3058 = vmatprep.subr.bf16.mxu0 %v3859_v33 }
 0x6cb   : > { %3060 = vmatpush1.bf16.msra.mxu0 %v3867_v30 }
 0x6cc   : > { %3062 = vmatprep.subr.bf16.mxu0 %v3877_v1 }
 0x6cf   : > { %3064 = vmatpush1.bf16.msra.mxu0 %v3885_v5 }
 0x6d0   : > { %3066 = vmatprep.subr.bf16.mxu0 %v3895_v6 }
 0x6d3   : > { %3068 = vmatpush1.bf16.msra.mxu0 %v3903_v3 }
 0x6d4   : > { %3070 = vmatprep.subr.bf16.mxu0 %v3913_v27 }
 0x6d7   : > { %3072 = vmatpush1.bf16.msra.mxu0 %v3921_v37 }
 0x6d8   : > { %3074 = vmatprep.subr.bf16.mxu0 %v3931_v21 }
 0x6db   : > { %3076 = vmatpush1.bf16.msra.mxu0 %v3939_v38 }
 0x791   : > { %v1913_v10 = vpop.f32.mrb[8].mxu0 }
 0x792   : > { %v1915_v23 = vpop.f32.mrb[9].mxu0 }
 0x793   : > { %v3118_v34 = vadd.f32 %v1915_v23, %v4067_v50 }
 0x795   : > { %v2581_v24 = vmul.f32 -1.442695, %v3118_v34  ;;  %v1919_v29 = vpop.f32.mrb[10].mxu0 }
 0x796   : > { %v1921_v33 = vpop.f32.mrb[11].mxu0 }
 0x797   : > { %3271 = vpow2.f32 %v2581_v24  ;;  %v3120_v30 = vadd.f32 %v1921_v33, %v4067_v50 }
 0x799   : > { %v2583_v1 = vmul.f32 -1.442695, %v3120_v30 }
 0x79b   : > { %3273 = vpow2.f32 %v2583_v1 }
 0x7a1   : > { %v3272_v5 = vpop.eup %3271 }
 0x7a2   : > { %v1941_v6 = vadd.f32 1.0, %v3272_v5 }
 0x7a4   : > { %3275 = vrcp.f32 %v1941_v6 }
 0x7a5   : > { %v3274_v3 = vpop.eup %3273 }
 0x7a6   : > { %v1943_v27 = vadd.f32 1.0, %v3274_v3 }
 0x7a8   : > { %3277 = vrcp.f32 %v1943_v27 }
 0x7ae   : > { %v3276_v37 = vpop.eup %3275 }
 0x7af   : > { %v1952_v21 = vmul.f32 %v3276_v37, %v4175_v36 }
 0x7b1   : > { %2815 = vmatprep.mubr.f32.mxu1 %v1952_v21 }
 0x7b2   : > { %v3278_v38 = vpop.eup %3277 }
 0x7b3   : > { %v1953_v31 = vmul.f32 %v3278_v38, %v4183_v35 }
 0x7b5   : > { %2816 = vmatmul.mubr.f32.vlgmr.msra.gmra.mrb[4].mxu1 %v1953_v31 }
 0x7b6   : > { %3080 = vmatpush3.bf16.msra.mxu1 %v3989_v2  ;;  %v3119_v2 = vadd.f32 %v1919_v29, %v4089_v13 }
 0x7b7   : > { %3082 = vmatprep.subr.bf16.mxu1 %v3999_v22 }
 0x7ba   : > { %3084 = vmatpush3.bf16.msra.mxu1 %v3999_v22  ;;  %v3117_v22 = vadd.f32 %v1913_v10, %v4089_v13 }
 0x7bb   : > { %3086 = vmatprep.subr.bf16.mxu1 %v4009_v9 }
 0x7be   : > { %3088 = vmatpush3.bf16.msra.mxu1 %v4009_v9  ;;  %v2582_v9 = vmul.f32 -1.442695, %v3119_v2 }
 0x7bf   : > { %3090 = vmatprep.subr.bf16.mxu1 %v4019_v25 }
 0x7c0   : > { %3279 = vpow2.f32 %v2582_v9 }
 0x7c2   : > { %3092 = vmatpush3.bf16.msra.mxu1 %v4019_v25  ;;  %v2580_v25 = vmul.f32 -1.442695, %v3117_v22 }
 0x7c3   : > { %3094 = vmatprep.subr.bf16.mxu1 %v4029_v16 }
 0x7c4   : > { %3281 = vpow2.f32 %v2580_v25 }
 0x7c6   : > { %3096 = vmatpush3.bf16.msra.mxu1 %v4029_v16 }
 0x7c7   : > { %3098 = vmatprep.subr.bf16.mxu1 %v4042_v41 }
 0x7ca   : > { %3100 = vmatpush3.bf16.msra.mxu1 %v4042_v41  ;;  %v3280_v16 = vpop.eup %3279 }
 0x7cb   : > { %3102 = vmatprep.subr.bf16.mxu1 %v4047_v45  ;;  %v1942_v63 = vadd.f32 1.0, %v3280_v16 }
 0x7cd   : > { %3283 = vrcp.f32 %v1942_v63 }
 0x7ce   : > { %3104 = vmatpush3.bf16.msra.mxu1 %v4047_v45  ;;  %v3282_v47 = vpop.eup %3281  ;;  %v1341_v45 = vmax.f32 %v3955_v57, 0.0 }
 0x7cf   : > { %3106 = vmatprep.subr.bf16.mxu1 %v4058_v48  ;;  %v1940_v41 = vadd.f32 1.0, %v3282_v47 }
 0x7d0   : > { %v1349_v54 = vsub.f32 0.0, %v1341_v45 }
 0x7d1   : > { %3285 = vrcp.f32 %v1940_v41 }
 0x7d2   : > { %3108 = vmatpush3.bf16.msra.mxu1 %v4058_v48  ;;  %v1364_v0 = vmul.f32 1.442695, %v1349_v54 }
 0x7d7   : > { %v3284_v62 = vpop.eup %3283 }
 0x7d8   : > { %v2034_v59 = vsub.f32 1.0, %v3284_v62 }
 0x7da   : > { %v2036_v42 = vmul.f32 %v2034_v59, %v4183_v35 }
 0x7db   : > { %v3286_v46 = vpop.eup %3285 }
 0x7dc   : > { %v2033_v4 = vsub.f32 1.0, %v3286_v46 }
 0x7de   : > { %v2035_v53 = vmul.f32 %v2033_v4, %v4175_v36  ;;  %v3401_v4 = vmov 0  }
 0x7df   : > { %3201 = vset.pattern.permute.xlu0 %v3401_v4  ;;  %3202 = vset.pattern.permute.xlu1 %v3401_v4 }
 0x888   : > { %v2817_v48 = vpop.f32.mrb[4].mxu1 }
 0x889   : > { %v3129_v7 = vadd.f32 %v2817_v48, %v4094_v58  ;;  %v2020_v60 = vpop.f32.mrb[5].mxu1 }
 0x88a   : > { %v3130_v19 = vadd.f32 %v2020_v60, %v4094_v58 }
 0x88b   : > { %3287 = vtanh.f32 %v3129_v7 }
 0x88c   : > { %3289 = vtanh.f32 %v3130_v19 }
 0x88d   : > { %3291 = vpow2.f32 %v1362_v52 }
 0x88e   : > { %3293 = vpow2.f32 %v1364_v0 }
 0x895   : > { %v3288_v55 = vpop.eup %3287 }
 0x896   : > { %v3290_v57 = vpop.eup %3289  ;;  %v2038_v8 = vmul.f32 %v3288_v55, %v3284_v62  ;;  %v2277_v55 = vpop.xlane.xlu0 %2276 }
 0x897   : > { %v2037_v51 = vmul.f32 %v3290_v57, %v3286_v46  ;;  %v3292_v15 = vpop.eup %3291 }
 0x898   : > { %v4228_v61 = vadd.f32 %v2038_v8, %v2036_v42  ;;  %v3294_v26 = vpop.eup %3293  ;;  %v2279_v8 = vpop.xlane.xlu1 %2278 }
 0x899   : > { %v4230_v43 = vadd.f32 %v2037_v51, %v2035_v53 }
 0x89a   : > { %v2273_v11 = vmul.f32 %v4103_v12, %v4228_v61  ;;  %v2053_v36 = vmul.f32 %v3294_v26, %v4228_v61  ;;  %v2283_v57 = vpop.xlane.xlu0 %2282 }
 0x89b   : > { %v2272_v32 = vmul.f32 %v4103_v12, %v4230_v43  ;;  %v2052_v39 = vmul.f32 %v3292_v15, %v4230_v43  ;;  %v2295_v26 = vmul.f32 0.17677669, %v2283_v57 }
 0x89c   : > { %2286 = vadd.xlane.f32.xlu0 %v2273_v11 }
 0x89d   : > { %2284 = vadd.xlane.f32.xlu1 %v2272_v32  ;;  %2119 = vmatmul.mubr.f32.vlgmr.msra.gmra.mrb[12].mxu0 %v2052_v39 }
 0x89e   : > { %2124 = vmatprep.mubr.f32.mxu0 %v3400_v28  ;;  %v2281_v42 = vpop.xlane.xlu0 %2280 }
 0x8a1   : > { %2125 = vmatmul.mubr.f32.gmra.mrb[14].mxu0 %v2053_v36 }
 0x929   : > { %v2287_v53 = vpop.xlane.xlu0 %2286 }
 0x92a   : > { %v2285_v51 = vpop.xlane.xlu1 %2284  ;;  %v2297_v15 = vmul.f32 0.17677669, %v2287_v53 }
 0x92b   : > { %v2296_v11 = vmul.f32 0.17677669, %v2285_v51 }
 0x970   : > { %v2120_v35 = vpop.f32.mrb[12].mxu0 }
 0x971   : > { %v2122_v10 = vpop.f32.mrb[13].mxu0  ;;  %v3121_v31 = vadd.f32 %v2120_v35, %v4089_v13  ;;  %v2292_v35 = vmul.f32 0.17677669, %v2277_v55  ;;  %v2341_v55 = vld [vmem:[#allocation7 + $0x8] sm:$0xff] }
 0x972   : > { %v3122_v23 = vadd.f32 %v2122_v10, %v4067_v50  ;;  %v2294_v10 = vmul.f32 0.17677669, %v2281_v42 }
 0x974   : > { %v2585_v34 = vmul.f32 -1.442695, %v3122_v23  ;;  %v2126_v24 = vpop.f32.mrb[14].mxu0 }
 0x975   : > { %v2128_v29 = vpop.f32.mrb[15].mxu0  ;;  %v3123_v38 = vadd.f32 %v2126_v24, %v4089_v13 }
 0x976   : > { %3295 = vpow2.f32 %v2585_v34  ;;  %v3124_v33 = vadd.f32 %v2128_v29, %v4067_v50  ;;  %v2584_v50 = vmul.f32 -1.442695, %v3121_v31  ;;  %v2302_v29 = vmax.f32 %v2292_v35, %v2296_v11 }
 0x977   : > { %v2586_v2 = vmul.f32 -1.442695, %v3123_v38 }
 0x978   : > { %v2587_v30 = vmul.f32 -1.442695, %v3124_v33  ;;  %v2301_v33 = vld [vmem:[#allocation6 + $0x8] sm:$0xff] }
 0x97a   : > { %3297 = vpow2.f32 %v2587_v30 }
 0x980   : > { %v3296_v1 = vpop.eup %3295 }
 0x981   : > { %v2148_v5 = vadd.f32 1.0, %v3296_v1 }
 0x983   : > { %3299 = vrcp.f32 %v2148_v5  ;;  %v2300_v5 = vld [vmem:[#allocation6] sm:$0xff] }
 0x984   : > { %v3298_v6 = vpop.eup %3297 }
 0x985   : > { %v2150_v28 = vadd.f32 1.0, %v3298_v6 }
 0x987   : > { %3301 = vrcp.f32 %v2150_v28 }
 0x988   : > { %3303 = vpow2.f32 %v2586_v2 }
 0x989   : > { %3305 = vpow2.f32 %v2584_v50 }
 0x98d   : > { %v3300_v3 = vpop.eup %3299 }
 0x98e   : > { %v2159_v27 = vmul.f32 %v3300_v3, %v2052_v39 }
 0x990   : > { %2850 = vmatprep.mubr.f32.mxu1 %v2159_v27 }
 0x991   : > { %v3302_v37 = vpop.eup %3301 }
 0x992   : > { %v2160_v21 = vmul.f32 %v3302_v37, %v2053_v36  ;;  %v3304_v22 = vpop.eup %3303 }
 0x993   : > { %v3306_v9 = vpop.eup %3305  ;;  %v2149_v25 = vadd.f32 1.0, %v3304_v22 }
 0x994   : > { %2851 = vmatmul.mubr.f32.vlgmr.msra.gmra.mrb[6].mxu1 %v2160_v21  ;;  %v2147_v16 = vadd.f32 1.0, %v3306_v9 }
 0x995   : > { %3307 = vrcp.f32 %v2149_v25 }
 0x996   : > { %3309 = vrcp.f32 %v2147_v16 }
 0x99f   : > { %v3308_v45 = vpop.eup %3307 }
 0x9a0   : > { %v3310_v13 = vpop.eup %3309  ;;  %v2241_v56 = vsub.f32 1.0, %v3308_v45 }
 0x9a1   : > { %v2240_v48 = vsub.f32 1.0, %v3310_v13 }
 0x9a2   : > { %v2243_v19 = vmul.f32 %v2241_v56, %v2053_v36 }
 0x9a3   : > { %v2242_v52 = vmul.f32 %v2240_v48, %v2052_v39  ;;  %v2293_v39 = vmul.f32 0.17677669, %v2279_v8 }
 0x9a5   : > { %v2305_v34 = vmax.f32 %v2293_v39, %v2297_v15 }
 0xa67   : > { %v2852_v47 = vpop.f32.mrb[6].mxu1 }
 0xa68   : > { %v3131_v63 = vadd.f32 %v2852_v47, %v4094_v58  ;;  %v2227_v41 = vpop.f32.mrb[7].mxu1 }
 0xa69   : > { %v3132_v18 = vadd.f32 %v2227_v41, %v4094_v58 }
 0xa6a   : > { %3311 = vtanh.f32 %v3131_v63 }
 0xa6b   : > { %3313 = vtanh.f32 %v3132_v18 }
 0xa74   : > { %v3312_v7 = vpop.eup %3311 }
 0xa75   : > { %v3314_v60 = vpop.eup %3313  ;;  %v2245_v54 = vmul.f32 %v3312_v7, %v3308_v45 }
 0xa76   : > { %v2244_v62 = vmul.f32 %v3314_v60, %v3310_v13 }
 0xa77   : > { %v4245_v46 = vadd.f32 %v2245_v54, %v2243_v19 }
 0xa78   : > { %v4247_v0 = vadd.f32 %v2244_v62, %v2242_v52 }
 0xa79   : > { %v2275_v59 = vmul.f32 %v4103_v12, %v4245_v46  ;;  %2252 = vst [vmem:[#allocation5 + $0x8] sm:$0xff] %v4245_v46 }
 0xa7a   : > { %v2274_v58 = vmul.f32 %v4103_v12, %v4247_v0  ;;  %2251 = vst [vmem:[#allocation5] sm:$0xff] %v4247_v0 }
 0xa7b   : > { %2290 = vadd.xlane.f32.xlu0 %v2275_v59 }
 0xa7c   : > { %2288 = vadd.xlane.f32.xlu1 %v2274_v58 }
 0xb08   : > { %v2291_v32 = vpop.xlane.xlu0 %2290 }
 0xb09   : > { %v2299_v36 = vmul.f32 0.17677669, %v2291_v32  ;;  %v2289_v12 = vpop.xlane.xlu1 %2288 }
 0xb0a   : > { %v2298_v23 = vmul.f32 0.17677669, %v2289_v12 }
 0xb0b   : > { %v2306_v24 = vmax.f32 %v2295_v26, %v2299_v36 }
 0xb0c   : > { %v2303_v30 = vmax.f32 %v2294_v10, %v2298_v23 }
 0xb0d   : > { %v2307_v1 = vmax.f32 %v2305_v34, %v2306_v24 }
 0xb0e   : > { %v2304_v6 = vmax.f32 %v2302_v29, %v2303_v30 }
 0xb0f   : > { %v2309_v28 = vmax.f32 %v2301_v33, %v2307_v1 }
 0xb10   : > { %v2308_v3 = vmax.f32 %v2300_v5, %v2304_v6 }
 0xb11   : > { %v2317_v27 = vsub.f32 %v2293_v39, %v2309_v28  ;;  %v2319_v37 = vsub.f32 %v2295_v26, %v2309_v28  ;;  %v2321_v21 = vsub.f32 %v2297_v15, %v2309_v28  ;;  %2436 = vst.msk [vmem:[#allocation6 + $0x8] sm:$0xff] %vm2344_vm5, %v2309_v28  ;;  %v2311_v38 = vsub.f32 %v2301_v33, %v2309_v28 }
 0xb12   : > { %v2323_v31 = vsub.f32 %v2299_v36, %v2309_v28  ;;  %2435 = vst.msk [vmem:[#allocation6] sm:$0xff] %vm2344_vm5, %v2308_v3  ;;  %v2316_v22 = vsub.f32 %v2292_v35, %v2308_v3  ;;  %v2318_v25 = vsub.f32 %v2294_v10, %v2308_v3  ;;  %v2320_v47 = vsub.f32 %v2296_v11, %v2308_v3 }
 0xb13   : > { %v2326_v2 = vmul.f32 1.442695, %v2317_v27  ;;  %v2330_v50 = vmul.f32 1.442695, %v2319_v37  ;;  %v2334_v9 = vmul.f32 1.442695, %v2321_v21  ;;  %v2322_v41 = vsub.f32 %v2298_v23, %v2308_v3 }
 0xb14   : > { %v2338_v16 = vmul.f32 1.442695, %v2323_v31  ;;  %v2314_v63 = vmul.f32 1.442695, %v2311_v38  ;;  %v2310_v18 = vsub.f32 %v2300_v5, %v2308_v3  ;;  %v2324_v45 = vmul.f32 1.442695, %v2316_v22 }
 0xb15   : > { %3315 = vpow2.f32 %v2326_v2  ;;  %v2328_v13 = vmul.f32 1.442695, %v2318_v25  ;;  %v2332_v56 = vmul.f32 1.442695, %v2320_v47  ;;  %v2336_v48 = vmul.f32 1.442695, %v2322_v41 }
 0xb16   : > { %3317 = vpow2.f32 %v2330_v50  ;;  %v2312_v7 = vmul.f32 1.442695, %v2310_v18  ;;  %v2340_v23 = vld [vmem:[#allocation7] sm:$0xff] }
 0xb17   : > { %3319 = vpow2.f32 %v2334_v9 }
 0xb18   : > { %3321 = vpow2.f32 %v2338_v16  ;;  %v2363_v16 = vld [vmem:[#allocation8] sm:$0xff] }
 0xb19   : > { %3323 = vpow2.f32 %v2314_v63 }
 0xb1a   : > { %3325 = vpow2.f32 %v2324_v45 }
 0xb1b   : > { %3327 = vpow2.f32 %v2328_v13  ;;  %v2364_v13 = vld [vmem:[#allocation8 + $0x8] sm:$0xff] }
 0xb1c   : > { %3329 = vpow2.f32 %v2332_v56 }
 0xb1d   : > { %3331 = vpow2.f32 %v2336_v48 }
 0xb1e   : > { %3333 = vpow2.f32 %v2312_v7 }
 0xb1f   : > { %v3316_v60 = vpop.eup %3315 }
 0xb20   : > { %v3318_v19 = vpop.eup %3317  ;;  %v2352_v54 = vsel %vm2344_vm5, %v3316_v60, 0.0  ;;  %2384 = vperm.xlu0 %3201, %v3316_v60  }
 0xb21   : > { %v3320_v52 = vpop.eup %3319  ;;  %v2353_v62 = vsel %vm2344_vm5, %v3318_v19, 0.0  ;;  %2394 = vperm.xlu1 %3202, %v3318_v19  }
 0xb22   : > { %v3322_v59 = vpop.eup %3321  ;;  %v2354_v58 = vadd.f32 %v2353_v62, %v2352_v54  ;;  %v2355_v57 = vsel %vm2344_vm5, %v3320_v52, 0.0 }
 0xb23   : > { %v3324_v4 = vpop.eup %3323  ;;  %v2357_v51 = vsel %vm2344_vm5, %v3322_v59, 0.0 }
 0xb24   : > { %v3326_v42 = vpop.eup %3325  ;;  %v2356_v8 = vadd.f32 %v2355_v57, %v2354_v58  ;;  %830 = vrot.lane.b32.xlu0 %v3702_v17, %s3399_s28  ;;  %v2343_v32 = vmul.f32 %v3324_v4, %v2341_v55 }
 0xb25   : > { %v3328_v53 = vpop.eup %3327  ;;  %v2345_v15 = vsel %vm2344_vm5, %v3326_v42, 0.0  ;;  %2404 = vperm.xlu1 %3202, %v3320_v52  }
 0xb26   : > { %v3330_v11 = vpop.eup %3329  ;;  %v2358_v39 = vadd.f32 %v2357_v51, %v2356_v8  ;;  %v2346_v26 = vsel %vm2344_vm5, %v3328_v53, 0.0 }
 0xb27   : > { %v3332_v36 = vpop.eup %3331  ;;  %v2347_v12 = vadd.f32 %v2346_v26, %v2345_v15  ;;  %v2348_v34 = vsel %vm2344_vm5, %v3330_v11, 0.0 }
 0xb28   : > { %v3334_v35 = vpop.eup %3333  ;;  %v2360_v10 = vadd.f32 %v2358_v39, %v2343_v32  ;;  %v2350_v17 = vsel %vm2344_vm5, %v3332_v36, 0.0 }
 0xb29   : > { %v2349_v24 = vadd.f32 %v2348_v34, %v2347_v12  ;;  %2414 = vperm.xlu1 %3202, %v3322_v59   ;;  %v2342_v29 = vmul.f32 %v3334_v35, %v2340_v23 }
 0xb2a   : > { %2362 = vst.msk [vmem:[#allocation7 + $0x8] sm:$0xff] %vm2344_vm5, %v2360_v10 }
 0xb2b   : > { %v2351_v33 = vadd.f32 %v2350_v17, %v2349_v24 }
 0xb2d   : > { %v2359_v30 = vadd.f32 %v2351_v33, %v2342_v29  ;;  %2379 = vperm.xlu1 %3202, %v3326_v42  }
 0xb2f   : > { %2361 = vst.msk [vmem:[#allocation7] sm:$0xff] %vm2344_vm5, %v2359_v30 }
 0xb31   : > { %2389 = vperm.xlu1 %3202, %v3328_v53  }
 0xb35   : > { %2399 = vperm.xlu1 %3202, %v3330_v11  }
 0xb39   : > { %2409 = vperm.xlu1 %3202, %v3332_v36  }
 0xb3d   : > { %2367 = vperm.xlu1 %3202, %v3334_v35  }
 0xb41   : > { %2372 = vperm.xlu1 %3202, %v3324_v4  }
 0xb45   : > { %832 = vrot.lane.b32.xlu1 %v3710_v44, %s3399_s28 }
 0xb9f   : > { %v2385_v1 = vpop.permute.xlu0 %2384 }
 0xba0   : > { %v2395_v5 = vpop.permute.xlu1 %2394  ;;  %v2418_v22 = vmul.f32 %v2385_v1, %v4106_v40 }
 0xba1   : > { %v2420_v44 = vmul.f32 %v2395_v5, %v4168_v14 }
 0xba3   : > { %v831_v6 = vpop.permute.xlu0 %830  ;;  %v2428_v18 = vadd.f32 %v2420_v44, %v2418_v22 }
 0xba4   : > { %836 = vst.msk [vmem:[#allocation2] sm:$0xff] %vm549_vm2, %v831_v6  ;;  %v2405_v28 = vpop.permute.xlu1 %2404 }
 0xba5   : > { %v2422_v47 = vmul.f32 %v2405_v28, %v4228_v61  ;;  %v2443_v61 = vld [vmem:[#allocation7] sm:$0xff] (!%p2589_p6) }
 0xba8   : > { %v2415_v3 = vpop.permute.xlu1 %2414 }
 0xbac   : > { %v2380_v27 = vpop.permute.xlu1 %2379 }
 0xbad   : > { %v2417_v31 = vmul.f32 %v2380_v27, %v4108_v20 }
 0xbb0   : > { %v2390_v37 = vpop.permute.xlu1 %2389 }
 0xbb1   : > { %v2419_v38 = vmul.f32 %v2390_v37, %v4170_v49  ;;  %v2424_v49 = vmul.f32 %v2415_v3, %v4245_v46  ;;  %v2444_v46 = vld [vmem:[#allocation7 + $0x8] sm:$0xff] (!%p2589_p6) }
 0xbb3   : > { %v2425_v9 = vadd.f32 %v2419_v38, %v2417_v31 }
 0xbb4   : > { %v2400_v21 = vpop.permute.xlu1 %2399 }
 0xbb5   : > { %v2421_v2 = vmul.f32 %v2400_v21, %v4230_v43  ;;  %v2429_v43 = vadd.f32 %v2428_v18, %v2422_v47 }
 0xbb7   : > { %v2426_v63 = vadd.f32 %v2425_v9, %v2421_v2  ;;  %v2430_v40 = vadd.f32 %v2429_v43, %v2424_v49 }
 0xbb8   : > { %v2410_v50 = vpop.permute.xlu1 %2409 }
 0xbb9   : > { %v2423_v25 = vmul.f32 %v2410_v50, %v4247_v0  ;;  %v3402_v0 = vmov (!%p2589_p6), 0  }
 0xbba   : > { %3335 = vset.pattern.permute.xlu0 (!%p2589_p6), %v3402_v0 }
 0xbbb   : > { %v2427_v45 = vadd.f32 %v2426_v63, %v2423_v25  ;;  %2447 = vperm.xlu0 (!%p2589_p6), %3335, %v2443_v61  }
 0xbbc   : > { %v2368_v41 = vpop.permute.xlu1 %2367 }
 0xbbd   : > { %v2375_v20 = vmul.f32 %v2368_v41, %v2363_v16 }
 0xbbf   : > { %v2431_v56 = vadd.f32 %v2427_v45, %v2375_v20  ;;  %2440 = sbr.rel (%p2589_p6) target bundleno = 3149 (0xc4d), region = 72  ;;  %2452 = vperm.xlu0 (!%p2589_p6), %3335, %v2444_v46  }
 0xbc0   : > { %v2373_v48 = vpop.permute.xlu1 %2372 }
 0xbc1   : > { %2433 = vst [vmem:[#allocation8] sm:$0xff] %v2431_v56  ;;  %v2376_v14 = vmul.f32 %v2373_v48, %v2364_v13 }
 0xbc3   : > { %v2432_v7 = vadd.f32 %v2430_v40, %v2376_v14 }
 0xbc4   : > { %v833_v60 = vpop.permute.xlu1 %832 }
 0xbc5   : > { %2434 = vst [vmem:[#allocation8 + $0x8] sm:$0xff] %v2432_v7  ;;  %837 = vst.msk [vmem:[#allocation2 + $0x8] sm:$0xff] %vm549_vm2, %v833_v60 }
 0xbc8   : > { %v2441_v52 = vld [vmem:[#allocation8] sm:$0xff] }
 0xbcc   : > { %v2442_v58 = vld [vmem:[#allocation8 + $0x8] sm:$0xff] }
 0xc3a   : > { %v2448_v19 = vpop.permute.xlu0 %2447 }
 0xc3b   : > { %3336 = vrcp.f32 %v2448_v19 }
 0xc3e   : > { %v2453_v54 = vpop.permute.xlu0 %2452 }
 0xc3f   : > { %3338 = vrcp.f32 %v2453_v54 }
 0xc45   : > { %v3337_v62 = vpop.eup %3336 }
 0xc46   : > { %v2456_v59 = vmul.f32 %v3337_v62, %v2441_v52 }
 0xc48   : > { %2459 = vst [vmem:[#allocation15] sm:$0xff] %v2456_v59 }
 0xc49   : > { %v3339_v4 = vpop.eup %3338 }
 0xc4a   : > { %v2458_v55 = vmul.f32 %v3339_v4, %v2442_v58 }
 0xc4c   : > { %2460 = vst [vmem:[#allocation15 + $0x8] sm:$0xff] %v2458_v55 }
 0xc4d PF: > { %p4284_p7 = scmp.eq.s32.totalorder %s2529_s20, 1  ;;  %s3403_s28 = smov [#allocation15]  }
 0xc4e   : > { %s2470_s29 = sshll.u32 %s3403_s28, 4  ;;  %s2471_s29 = int_to_ptr.vmem [resolvable:$true] %s2470_s29 }
 0xc4f   : > { %s3340_s30 = scalar_lea.vmem %s2471_s29, 256  ;;  %p3347_p11 = scmp.lt.s32.totalorder %s2471_s29, %s2471_s29 }
 0xc50   : > { %p3341_p8 = scmp.ne.s32.totalorder %s2471_s29, %s3340_s30  ;;  %p3348_p12 = scmp.lt.s32.totalorder %s3340_s30, %s3340_s30 }
 0xc52   : > { %p3342_p9 = pnand %p3341_p8, %p4284_p7  ;;  %p3349_p13 = por %p3348_p12, %p3347_p11 }
 0xc54   : > { %p3343_p10 = pneg %p3342_p9 }
 0xc56   : > { %p3350_p0 = pnand %p3349_p13, %p3343_p10 }
 0xc58   : > { %3353 = shalt.err (!%p3350_p0)
}
 0xc59   : > { %s3354_s20 = scalar_lea.hbm %s4330_s11, 256 }
 0xc5a   : > { %p3355_p1 = scmp.ne.s32.totalorder %s4330_s11, %s3354_s20  ;;  %p3360_p4 = scmp.lt.u32.totalorder %s3354_s20, %s4330_s11 }
 0xc5c   : > { %p3356_p2 = pnand %p3355_p1, %p4284_p7 }
 0xc5e   : > { %p3357_p3 = pneg %p3356_p2 }
 0xc60   : > { %p3362_p5 = pnand %p3360_p4, %p3357_p3 }
 0xc62   : > { %3365 = shalt.err (!%p3362_p5)
}
 0xc63   : > { %s3404_s22 = smov 128   ;;  %s3405_s23 = smov 8  }
 0xc64   : > { %3158 = dma.vmem_to_hbm [thread:$0]  (%p4284_p7), %s2471_s29, 256, %s4330_s11, [#allocation16], %s3404_s22, %s3404_s22, %s3405_s23  }
 0xc65   : > { %3379 = dma.done.wait (%p4284_p7), [#allocation16], 256  }
 0xc66   : > { %3381 = vsyncadd (%p4284_p7), [#allocation16], 4294967040 }
 0xc67 PF: > { %s22_s19 = sadd.s32 1, %s3392_s19   ;;  %s4332_s17 = smov %s3388_s18 }
 0xc68   : > { %p19_p6 = scmp.ge.s32.totalorder %s22_s19, 4   ;;  %s4333_s18 = smov %s4335_s21 }
 0xc6a   :  { %21 = sbr.rel (!%p19_p6) target bundleno = 2 (0x2), region = 106 }
 0xc71   :  { %2486 = vsyncpa [#allocation16], 1 }
 0xc72   :  { %2488 = vsyncpa [#allocation16 + $0x1], 1 }

</bundles_post_ra>
